<compile_context>
chip_gen: v6e
topology: v6e:2x2x1
jax: 0.10.0
libtpu: 0.0.40
codegen_flags: <defaults>
</compile_context>

<pallas_src>
import functools

import jax
import jax.numpy as jnp
from jax import lax
from jax.experimental import pallas as pl
from jax.experimental.pallas import tpu as pltpu

EPS = 1e-8  # MultichannelLayerNorm eps


def _round_up(v, m):
    return (v + m - 1) // m * m


# ---------------------------------------------------------------------------
# Fused Pallas kernel (one grid step = one sample, whole forward in VMEM)
# ---------------------------------------------------------------------------
def _frame_encoder_kernel(x_ref, s_ref, st_ref, g_ref, b_ref, m_ref,
                          w1_ref, b1_ref, w2_ref, b2_ref, o_ref, *,
                          cin, cout, feats, wp, lw, k1, k2, fuse_identity):
    f32 = jnp.float32
    xc = x_ref[0].astype(f32)          # (Cin, Lw)  wide-flat input: x[c, h, w] at lane h*Wp+w
    mask = m_ref[...]                  # (1, Lw)    1 on valid frames, 0 on the 2 pad columns

    # ---- MultichannelLayerNorm over the feature (H) axis, per (channel, frame) ----
    # Column (per-frame) sums over H via a 0/1 selector matmul (stays in the flat layout).
    inv_h = 1.0 / feats
    mean_c = jnp.dot(xc, s_ref[...], preferred_element_type=f32) * inv_h        # (Cin, Wp)
    ex2_c = jnp.dot(xc * xc, s_ref[...], preferred_element_type=f32) * inv_h    # (Cin, Wp)
    var_c = ex2_c - mean_c * mean_c
    inv_c = lax.rsqrt(var_c + EPS)                                              # EUP
    mean_w = jnp.dot(mean_c, st_ref[...], preferred_element_type=f32)           # (Cin, Lw)
    inv_w = jnp.dot(inv_c, st_ref[...], preferred_element_type=f32)             # (Cin, Lw)
    xn = ((xc - mean_w) * inv_w * g_ref[...] + b_ref[...]) * mask               # (Cin, Lw)

    # ---- in-kernel im2col helpers (pure static lane-offset slices, no reshapes) ----
    def pad_flat(a):                   # (C, Lw) -> zero-padded flat image, (C, Lw + 2*Wp + 2)
        c = a.shape[0]
        z = jnp.zeros((c, wp + 1), a.dtype)
        return jnp.concatenate([z, a, z], axis=1)

    def taps(a_pad):                   # 9 shifted (C, Lw) views, tap-major / channel-minor
        return [a_pad[:, kh * wp + kw: kh * wp + kw + lw]
                for kh in range(3) for kw in range(3)]

    # ---- conv1 (3x3, stride 1) + bias + squared ReLU --------------------------------
    p1 = taps(pad_flat(xn))
    if k1 > 9 * cin:
        p1.append(jnp.zeros((k1 - 9 * cin, lw), f32))
    slab1 = jnp.concatenate(p1, axis=0).astype(jnp.bfloat16)                    # (K1, Lw)
    h1 = jnp.dot(w1_ref[...], slab1, preferred_element_type=f32) + b1_ref[...]  # (Co, Lw)
    a1 = jnp.maximum(h1, 0.0)
    a1 = (a1 * a1) * mask              # squared ReLU; zero the 2 pad columns for conv2's taps

    # ---- conv2 (3x3) + identity 1x1 conv fused into a single matmul + bias ----------
    p2 = taps(pad_flat(a1))
    kused = 9 * cout
    if fuse_identity:
        p2.append(xc)                  # identity path rides as extra K rows of the same dot
        kused += cin
    if k2 > kused:
        p2.append(jnp.zeros((k2 - kused, lw), f32))
    slab2 = jnp.concatenate(p2, axis=0).astype(jnp.bfloat16)                    # (K2, Lw)
    y = jnp.dot(w2_ref[...], slab2, preferred_element_type=f32) + b2_ref[...]   # (Co, Lw)
    if not fuse_identity:              # identity == nn.Identity(): exact f32 residual add
        y = y + xc
    o_ref[0] = y.astype(o_ref.dtype)   # lane-dense (Co, Lw) store


# ---------------------------------------------------------------------------
# Wrapper: cheap XLA-side layout prep (single passes over small tensors) + pallas_call
# ---------------------------------------------------------------------------
def frame_encoder_forward(x, params, downsample=True, stride=(2, 1)):
    N, cin, H, W = x.shape
    cout = params["w1"].shape[0]
    sh, sw = stride if downsample else (1, 1)
    # nn.Identity only when channels match AND no downsample (fixed guard).
    fuse_identity = downsample or (cin != cout)

    wp = W + 2                          # padded frame width
    lw = H * wp                         # wide-flat spatial length (lane dim)
    k1 = _round_up(9 * cin, 8)
    k2 = _round_up(9 * cout + (cin if fuse_identity else 0), 8)

    # wide-flat input: x padded on the right of W by 2 zero columns, then flattened
    x_wide = jnp.pad(x, ((0, 0), (0, 0), (0, 0), (0, wp - W))).reshape(N, cin, lw)
    col = jnp.arange(lw, dtype=jnp.int32) % wp
    sel = (col[:, None] == jnp.arange(wp, dtype=jnp.int32)[None, :]).astype(jnp.float32)  # (Lw, Wp)
    sel_t = jnp.transpose(sel)                                                            # (Wp, Lw)
    mask = (col < W).astype(jnp.float32).reshape(1, lw)
    g_w = jnp.repeat(params["ln_g"].astype(jnp.float32), wp, axis=1)   # per-(c, feature) affine
    b_w = jnp.repeat(params["ln_b"].astype(jnp.float32), wp, axis=1)

    w1m = jnp.transpose(params["w1"], (0, 2, 3, 1)).reshape(cout, 9 * cin)
    w1m = jnp.pad(w1m, ((0, 0), (0, k1 - 9 * cin))).astype(jnp.bfloat16)
    w2m = jnp.transpose(params["w2"], (0, 2, 3, 1)).reshape(cout, 9 * cout)
    if fuse_identity:
        w2m = jnp.concatenate([w2m, params["wi"].reshape(cout, cin)], axis=1)
        bias2 = (params["b2"] + params["bi"]).reshape(cout, 1).astype(jnp.float32)
    else:
        bias2 = params["b2"].reshape(cout, 1).astype(jnp.float32)
    w2m = jnp.pad(w2m, ((0, 0), (0, k2 - w2m.shape[1]))).astype(jnp.bfloat16)
    bias1 = params["b1"].reshape(cout, 1).astype(jnp.float32)

    kernel = functools.partial(
        _frame_encoder_kernel, cin=cin, cout=cout, feats=H, wp=wp, lw=lw,
        k1=k1, k2=k2, fuse_identity=fuse_identity)

    def full(a):
        nd = a.ndim
        return pl.BlockSpec(a.shape, lambda n, _nd=nd: (0,) * _nd)

    out_wide = pl.pallas_call(
        kernel,
        out_shape=jax.ShapeDtypeStruct((N, cout, lw), x.dtype),
        grid=(N,),
        in_specs=[
            pl.BlockSpec((1, cin, lw), lambda n: (n, 0, 0)),
            full(sel), full(sel_t), full(g_w), full(b_w), full(mask),
            full(w1m), full(bias1), full(w2m), full(bias2),
        ],
        out_specs=pl.BlockSpec((1, cout, lw), lambda n: (n, 0, 0)),
        compiler_params=pltpu.CompilerParams(
            dimension_semantics=("parallel",),          # shards samples across v7x's 2 TCs
            vmem_limit_bytes=64 * 1024 * 1024),
    )(x_wide, sel, sel_t, g_w, b_w, mask, w1m, bias1, w2m, bias2)

    # de-widen + apply the conv2/identity stride by subsampling the full-resolution result
    out = out_wide.reshape(N, cout, H, wp)[:, :, ::sh, :W]
    if sw != 1:
        out = out[:, :, :, ::sw]
    return out


# ---------------------------------------------------------------------------
# Pure-JAX / XLA reference (f32) for validation
# ---------------------------------------------------------------------------
def ref_forward(x, params, downsample=True, stride=(2, 1)):
    N, cin, H, W = x.shape
    cout = params["w1"].shape[0]
    st = stride if downsample else (1, 1)
    fuse_identity = downsample or (cin != cout)
    dn = ("NCHW", "OIHW", "NCHW")
    mean = jnp.mean(x, axis=2, keepdims=True)
    var = jnp.mean((x - mean) ** 2, axis=2, keepdims=True)
    xn = (x - mean) / jnp.sqrt(var + EPS)
    xn = xn * params["ln_g"][None, :, :, None] + params["ln_b"][None, :, :, None]
    a = lax.conv_general_dilated(xn, params["w1"], (1, 1), ((1, 1), (1, 1)),
                                 dimension_numbers=dn) + params["b1"].reshape(1, -1, 1, 1)
    a = jnp.maximum(a, 0.0) ** 2
    h = lax.conv_general_dilated(a, params["w2"], st, ((1, 1), (1, 1)),
                                 dimension_numbers=dn) + params["b2"].reshape(1, -1, 1, 1)
    if fuse_identity:
        idn = lax.conv_general_dilated(x, params["wi"], st, ((0, 0), (0, 0)),
                                       dimension_numbers=dn) + params["bi"].reshape(1, -1, 1, 1)
    else:
        idn = x
    return idn + h


# ---------------------------------------------------------------------------
if __name__ == "__main__":
    # features=H=32, frames=W=30 -> wide-flat lane dim H*(W+2)=1024 (multiple of 128)
    N, Cin, Cout, H, W = 2, 4, 8, 32, 30
    key = jax.random.PRNGKey(0)
    kx, k1, k2, k3, k4, k5, k6, k7, k8 = jax.random.split(key, 9)

    x = jax.random.normal(kx, (N, Cin, H, W), jnp.float32)
    params = dict(
        ln_g=1.0 + 0.1 * jax.random.normal(k7, (Cin, H), jnp.float32),
        ln_b=0.1 * jax.random.normal(k8, (Cin, H), jnp.float32),
        w1=0.1 * jax.random.normal(k1, (Cout, Cin, 3, 3), jnp.float32),
        b1=0.05 * jax.random.normal(k2, (Cout,), jnp.float32),
        w2=0.1 * jax.random.normal(k3, (Cout, Cout, 3, 3), jnp.float32),
        b2=0.05 * jax.random.normal(k4, (Cout,), jnp.float32),
        wi=0.1 * jax.random.normal(k5, (Cout, Cin, 1, 1), jnp.float32),
        bi=0.05 * jax.random.normal(k6, (Cout,), jnp.float32),
    )

    fwd = jax.jit(functools.partial(frame_encoder_forward, downsample=True, stride=(2, 1)))
    out = jax.block_until_ready(fwd(x, params))

    ref = ref_forward(x, params, downsample=True, stride=(2, 1))
    assert out.shape == ref.shape == (N, Cout, 16, 30), (out.shape, ref.shape)
    err = float(jnp.max(jnp.abs(out - ref)))
    # bf16 MXU operands (f32 accumulate) vs a pure-f32 reference -> loosened tolerance.
    assert jnp.allclose(out, ref, atol=8e-2, rtol=8e-2), err
    print("KERNEL_OK")
</pallas_src>

<mosaic_0001>
module attributes {stable_mosaic.version = 11 : i64} {
  func.func @_frame_encoder_kernel(%arg0: i32, %arg1: memref<1x4x1024xf32, #tpu.memory_space<vmem>>, %arg2: memref<1024x32xf32, #tpu.memory_space<vmem>>, %arg3: memref<32x1024xf32, #tpu.memory_space<vmem>>, %arg4: memref<4x1024xf32, #tpu.memory_space<vmem>>, %arg5: memref<4x1024xf32, #tpu.memory_space<vmem>>, %arg6: memref<1x1024xf32, #tpu.memory_space<vmem>>, %arg7: memref<8x40xbf16, #tpu.memory_space<vmem>>, %arg8: memref<8x1xf32, #tpu.memory_space<vmem>>, %arg9: memref<8x80xbf16, #tpu.memory_space<vmem>>, %arg10: memref<8x1xf32, #tpu.memory_space<vmem>>, %arg11: memref<1x8x1024xf32, #tpu.memory_space<vmem>>) attributes {dimension_semantics = [#tpu.dimension_semantics<parallel>], iteration_bounds = array<i64: 2>, scalar_prefetch = 0 : i64, scratch_operands = 0 : i64, tpu.core_type = #tpu.core_type<tc>, window_params = [{transform_indices = @transform_0, window_bounds = array<i64: 1, 4, 1024>}, {pipeline_mode = #tpu.pipeline_mode<synchronous>, transform_indices = @transform_1, window_bounds = array<i64: 1024, 32>}, {pipeline_mode = #tpu.pipeline_mode<synchronous>, transform_indices = @transform_2, window_bounds = array<i64: 32, 1024>}, {pipeline_mode = #tpu.pipeline_mode<synchronous>, transform_indices = @transform_3, window_bounds = array<i64: 4, 1024>}, {pipeline_mode = #tpu.pipeline_mode<synchronous>, transform_indices = @transform_4, window_bounds = array<i64: 4, 1024>}, {pipeline_mode = #tpu.pipeline_mode<synchronous>, transform_indices = @transform_5, window_bounds = array<i64: 1, 1024>}, {pipeline_mode = #tpu.pipeline_mode<synchronous>, transform_indices = @transform_6, window_bounds = array<i64: 8, 40>}, {pipeline_mode = #tpu.pipeline_mode<synchronous>, transform_indices = @transform_7, window_bounds = array<i64: 8, 1>}, {pipeline_mode = #tpu.pipeline_mode<synchronous>, transform_indices = @transform_8, window_bounds = array<i64: 8, 80>}, {pipeline_mode = #tpu.pipeline_mode<synchronous>, transform_indices = @transform_9, window_bounds = array<i64: 8, 1>}, {transform_indices = @transform_10, window_bounds = array<i64: 1, 8, 1024>}]} {
    %c0 = arith.constant 0 : index
    %c0_0 = arith.constant 0 : index
    %c0_1 = arith.constant 0 : index
    %0 = vector.load %arg1[%c0, %c0_0, %c0_1] : memref<1x4x1024xf32, #tpu.memory_space<vmem>>, vector<1x4x1024xf32>
    %1 = vector.shape_cast %0 : vector<1x4x1024xf32> to vector<4x1024xf32>
    %c0_2 = arith.constant 0 : index
    %c0_3 = arith.constant 0 : index
    %2 = vector.load %arg6[%c0_2, %c0_3] : memref<1x1024xf32, #tpu.memory_space<vmem>>, vector<1x1024xf32>
    %c0_4 = arith.constant 0 : index
    %c0_5 = arith.constant 0 : index
    %3 = vector.load %arg2[%c0_4, %c0_5] : memref<1024x32xf32, #tpu.memory_space<vmem>>, vector<1024x32xf32>
    %cst = arith.constant dense<0.000000e+00> : vector<4x32xf32>
    %4 = tpu.matmul %1, %3, %cst {dimension_numbers = #tpu.dot_dimension_numbers<[1], [0], [0], [1], [0, 0, 1, 1], [], []>} : vector<4x1024xf32>, vector<1024x32xf32>, vector<4x32xf32> -> vector<4x32xf32>
    %cst_6 = arith.constant 3.125000e-02 : f32
    %5 = vector.broadcast %cst_6 : f32 to vector<4x32xf32>
    %6 = arith.mulf %4, %5 : vector<4x32xf32>
    %7 = arith.mulf %1, %1 : vector<4x1024xf32>
    %c0_7 = arith.constant 0 : index
    %c0_8 = arith.constant 0 : index
    %8 = vector.load %arg2[%c0_7, %c0_8] : memref<1024x32xf32, #tpu.memory_space<vmem>>, vector<1024x32xf32>
    %cst_9 = arith.constant dense<0.000000e+00> : vector<4x32xf32>
    %9 = tpu.matmul %7, %8, %cst_9 {dimension_numbers = #tpu.dot_dimension_numbers<[1], [0], [0], [1], [0, 0, 1, 1], [], []>} : vector<4x1024xf32>, vector<1024x32xf32>, vector<4x32xf32> -> vector<4x32xf32>
    %cst_10 = arith.constant 3.125000e-02 : f32
    %10 = vector.broadcast %cst_10 : f32 to vector<4x32xf32>
    %11 = arith.mulf %9, %10 : vector<4x32xf32>
    %12 = arith.mulf %6, %6 : vector<4x32xf32>
    %13 = arith.subf %11, %12 : vector<4x32xf32>
    %cst_11 = arith.constant 9.99999993E-9 : f32
    %14 = vector.broadcast %cst_11 : f32 to vector<4x32xf32>
    %15 = arith.addf %13, %14 : vector<4x32xf32>
    %16 = math.rsqrt %15 : vector<4x32xf32>
    %c0_12 = arith.constant 0 : index
    %c0_13 = arith.constant 0 : index
    %17 = vector.load %arg3[%c0_12, %c0_13] : memref<32x1024xf32, #tpu.memory_space<vmem>>, vector<32x1024xf32>
    %cst_14 = arith.constant dense<0.000000e+00> : vector<4x1024xf32>
    %18 = tpu.matmul %6, %17, %cst_14 {dimension_numbers = #tpu.dot_dimension_numbers<[1], [0], [0], [1], [0, 0, 1, 1], [], []>} : vector<4x32xf32>, vector<32x1024xf32>, vector<4x1024xf32> -> vector<4x1024xf32>
    %c0_15 = arith.constant 0 : index
    %c0_16 = arith.constant 0 : index
    %19 = vector.load %arg3[%c0_15, %c0_16] : memref<32x1024xf32, #tpu.memory_space<vmem>>, vector<32x1024xf32>
    %cst_17 = arith.constant dense<0.000000e+00> : vector<4x1024xf32>
    %20 = tpu.matmul %16, %19, %cst_17 {dimension_numbers = #tpu.dot_dimension_numbers<[1], [0], [0], [1], [0, 0, 1, 1], [], []>} : vector<4x32xf32>, vector<32x1024xf32>, vector<4x1024xf32> -> vector<4x1024xf32>
    %21 = arith.subf %1, %18 : vector<4x1024xf32>
    %22 = arith.mulf %21, %20 : vector<4x1024xf32>
    %c0_18 = arith.constant 0 : index
    %c0_19 = arith.constant 0 : index
    %23 = vector.load %arg4[%c0_18, %c0_19] : memref<4x1024xf32, #tpu.memory_space<vmem>>, vector<4x1024xf32>
    %24 = arith.mulf %22, %23 : vector<4x1024xf32>
    %c0_20 = arith.constant 0 : index
    %c0_21 = arith.constant 0 : index
    %25 = vector.load %arg5[%c0_20, %c0_21] : memref<4x1024xf32, #tpu.memory_space<vmem>>, vector<4x1024xf32>
    %26 = arith.addf %24, %25 : vector<4x1024xf32>
    %27 = vector.broadcast %2 : vector<1x1024xf32> to vector<4x1024xf32>
    %28 = arith.mulf %26, %27 : vector<4x1024xf32>
    %cst_22 = arith.constant 0.000000e+00 : f32
    %29 = vector.broadcast %cst_22 : f32 to vector<4x33xf32>
    %30 = tpu.concatenate %29, %28, %29 in 1 : vector<4x33xf32>, vector<4x1024xf32>, vector<4x33xf32> -> vector<4x1090xf32>
    %31 = vector.extract_strided_slice %30 {offsets = [0, 0], sizes = [4, 1024], strides = [1, 1]} : vector<4x1090xf32> to vector<4x1024xf32>
    %32 = vector.extract_strided_slice %30 {offsets = [0, 1], sizes = [4, 1024], strides = [1, 1]} : vector<4x1090xf32> to vector<4x1024xf32>
    %33 = vector.extract_strided_slice %30 {offsets = [0, 2], sizes = [4, 1024], strides = [1, 1]} : vector<4x1090xf32> to vector<4x1024xf32>
    %34 = vector.extract_strided_slice %30 {offsets = [0, 32], sizes = [4, 1024], strides = [1, 1]} : vector<4x1090xf32> to vector<4x1024xf32>
    %35 = vector.extract_strided_slice %30 {offsets = [0, 33], sizes = [4, 1024], strides = [1, 1]} : vector<4x1090xf32> to vector<4x1024xf32>
    %36 = vector.extract_strided_slice %30 {offsets = [0, 34], sizes = [4, 1024], strides = [1, 1]} : vector<4x1090xf32> to vector<4x1024xf32>
    %37 = vector.extract_strided_slice %30 {offsets = [0, 64], sizes = [4, 1024], strides = [1, 1]} : vector<4x1090xf32> to vector<4x1024xf32>
    %38 = vector.extract_strided_slice %30 {offsets = [0, 65], sizes = [4, 1024], strides = [1, 1]} : vector<4x1090xf32> to vector<4x1024xf32>
    %39 = vector.extract_strided_slice %30 {offsets = [0, 66], sizes = [4, 1024], strides = [1, 1]} : vector<4x1090xf32> to vector<4x1024xf32>
    %cst_23 = arith.constant 0.000000e+00 : f32
    %40 = vector.broadcast %cst_23 : f32 to vector<4x1024xf32>
    %41 = tpu.concatenate %31, %32, %33, %34, %35, %36, %37, %38, %39, %40 in 0 : vector<4x1024xf32>, vector<4x1024xf32>, vector<4x1024xf32>, vector<4x1024xf32>, vector<4x1024xf32>, vector<4x1024xf32>, vector<4x1024xf32>, vector<4x1024xf32>, vector<4x1024xf32>, vector<4x1024xf32> -> vector<40x1024xf32>
    %42 = arith.truncf %41 : vector<40x1024xf32> to vector<40x1024xbf16>
    %c0_24 = arith.constant 0 : index
    %c0_25 = arith.constant 0 : index
    %43 = vector.load %arg7[%c0_24, %c0_25] : memref<8x40xbf16, #tpu.memory_space<vmem>>, vector<8x40xbf16>
    %cst_26 = arith.constant dense<0.000000e+00> : vector<8x1024xf32>
    %44 = tpu.matmul %43, %42, %cst_26 {dimension_numbers = #tpu.dot_dimension_numbers<[1], [0], [0], [1], [0, 0, 1, 1], [], []>} : vector<8x40xbf16>, vector<40x1024xbf16>, vector<8x1024xf32> -> vector<8x1024xf32>
    %c0_27 = arith.constant 0 : index
    %c0_28 = arith.constant 0 : index
    %45 = vector.load %arg8[%c0_27, %c0_28] : memref<8x1xf32, #tpu.memory_space<vmem>>, vector<8x1xf32>
    %46 = vector.broadcast %45 : vector<8x1xf32> to vector<8x1024xf32>
    %47 = arith.addf %44, %46 : vector<8x1024xf32>
    %cst_29 = arith.constant 0.000000e+00 : f32
    %48 = vector.broadcast %cst_29 : f32 to vector<8x1024xf32>
    %49 = arith.maximumf %47, %48 : vector<8x1024xf32>
    %50 = arith.mulf %49, %49 : vector<8x1024xf32>
    %51 = vector.broadcast %2 : vector<1x1024xf32> to vector<8x1024xf32>
    %52 = arith.mulf %50, %51 : vector<8x1024xf32>
    %cst_30 = arith.constant 0.000000e+00 : f32
    %53 = vector.broadcast %cst_30 : f32 to vector<8x33xf32>
    %54 = tpu.concatenate %53, %52, %53 in 1 : vector<8x33xf32>, vector<8x1024xf32>, vector<8x33xf32> -> vector<8x1090xf32>
    %55 = vector.extract_strided_slice %54 {offsets = [0, 0], sizes = [8, 1024], strides = [1, 1]} : vector<8x1090xf32> to vector<8x1024xf32>
    %56 = vector.extract_strided_slice %54 {offsets = [0, 1], sizes = [8, 1024], strides = [1, 1]} : vector<8x1090xf32> to vector<8x1024xf32>
    %57 = vector.extract_strided_slice %54 {offsets = [0, 2], sizes = [8, 1024], strides = [1, 1]} : vector<8x1090xf32> to vector<8x1024xf32>
    %58 = vector.extract_strided_slice %54 {offsets = [0, 32], sizes = [8, 1024], strides = [1, 1]} : vector<8x1090xf32> to vector<8x1024xf32>
    %59 = vector.extract_strided_slice %54 {offsets = [0, 33], sizes = [8, 1024], strides = [1, 1]} : vector<8x1090xf32> to vector<8x1024xf32>
    %60 = vector.extract_strided_slice %54 {offsets = [0, 34], sizes = [8, 1024], strides = [1, 1]} : vector<8x1090xf32> to vector<8x1024xf32>
    %61 = vector.extract_strided_slice %54 {offsets = [0, 64], sizes = [8, 1024], strides = [1, 1]} : vector<8x1090xf32> to vector<8x1024xf32>
    %62 = vector.extract_strided_slice %54 {offsets = [0, 65], sizes = [8, 1024], strides = [1, 1]} : vector<8x1090xf32> to vector<8x1024xf32>
    %63 = vector.extract_strided_slice %54 {offsets = [0, 66], sizes = [8, 1024], strides = [1, 1]} : vector<8x1090xf32> to vector<8x1024xf32>
    %cst_31 = arith.constant 0.000000e+00 : f32
    %64 = vector.broadcast %cst_31 : f32 to vector<4x1024xf32>
    %65 = tpu.concatenate %55, %56, %57, %58, %59, %60, %61, %62, %63, %1, %64 in 0 : vector<8x1024xf32>, vector<8x1024xf32>, vector<8x1024xf32>, vector<8x1024xf32>, vector<8x1024xf32>, vector<8x1024xf32>, vector<8x1024xf32>, vector<8x1024xf32>, vector<8x1024xf32>, vector<4x1024xf32>, vector<4x1024xf32> -> vector<80x1024xf32>
    %66 = arith.truncf %65 : vector<80x1024xf32> to vector<80x1024xbf16>
    %c0_32 = arith.constant 0 : index
    %c0_33 = arith.constant 0 : index
    %67 = vector.load %arg9[%c0_32, %c0_33] : memref<8x80xbf16, #tpu.memory_space<vmem>>, vector<8x80xbf16>
    %cst_34 = arith.constant dense<0.000000e+00> : vector<8x1024xf32>
    %68 = tpu.matmul %67, %66, %cst_34 {dimension_numbers = #tpu.dot_dimension_numbers<[1], [0], [0], [1], [0, 0, 1, 1], [], []>} : vector<8x80xbf16>, vector<80x1024xbf16>, vector<8x1024xf32> -> vector<8x1024xf32>
    %c0_35 = arith.constant 0 : index
    %c0_36 = arith.constant 0 : index
    %69 = vector.load %arg10[%c0_35, %c0_36] : memref<8x1xf32, #tpu.memory_space<vmem>>, vector<8x1xf32>
    %70 = vector.broadcast %69 : vector<8x1xf32> to vector<8x1024xf32>
    %71 = arith.addf %68, %70 : vector<8x1024xf32>
    %c0_37 = arith.constant 0 : index
    %c0_38 = arith.constant 0 : index
    %c0_39 = arith.constant 0 : index
    %72 = vector.load %arg11[%c0_37, %c0_38, %c0_39] : memref<1x8x1024xf32, #tpu.memory_space<vmem>>, vector<1x8x1024xf32>
    %73 = vector.shape_cast %72 : vector<1x8x1024xf32> to vector<8x1024xf32>
    %74 = vector.shape_cast %71 : vector<8x1024xf32> to vector<1x8x1024xf32>
    tpu.vector_store %arg11[%c0_37, %c0_38, %c0_39], %74 {strides = array<i32>} : memref<1x8x1024xf32, #tpu.memory_space<vmem>>, vector<1x8x1024xf32>,
    return
  }
  func.func @transform_0(%arg0: i32) -> (i32, i32, i32) {
    %c0_i32 = arith.constant 0 : i32
    %c0_i32_0 = arith.constant 0 : i32
    %c0_i32_1 = arith.constant 0 : i32
    return %arg0, %c0_i32, %c0_i32_0 : i32, i32, i32
  }
  func.func @transform_1(%arg0: i32) -> (i32, i32) {
    %c0_i32 = arith.constant 0 : i32
    %c0_i32_0 = arith.constant 0 : i32
    %c0_i32_1 = arith.constant 0 : i32
    return %c0_i32, %c0_i32_0 : i32, i32
  }
  func.func @transform_2(%arg0: i32) -> (i32, i32) {
    %c0_i32 = arith.constant 0 : i32
    %c0_i32_0 = arith.constant 0 : i32
    %c0_i32_1 = arith.constant 0 : i32
    return %c0_i32, %c0_i32_0 : i32, i32
  }
  func.func @transform_3(%arg0: i32) -> (i32, i32) {
    %c0_i32 = arith.constant 0 : i32
    %c0_i32_0 = arith.constant 0 : i32
    %c0_i32_1 = arith.constant 0 : i32
    return %c0_i32, %c0_i32_0 : i32, i32
  }
  func.func @transform_4(%arg0: i32) -> (i32, i32) {
    %c0_i32 = arith.constant 0 : i32
    %c0_i32_0 = arith.constant 0 : i32
    %c0_i32_1 = arith.constant 0 : i32
    return %c0_i32, %c0_i32_0 : i32, i32
  }
  func.func @transform_5(%arg0: i32) -> (i32, i32) {
    %c0_i32 = arith.constant 0 : i32
    %c0_i32_0 = arith.constant 0 : i32
    %c0_i32_1 = arith.constant 0 : i32
    return %c0_i32, %c0_i32_0 : i32, i32
  }
  func.func @transform_6(%arg0: i32) -> (i32, i32) {
    %c0_i32 = arith.constant 0 : i32
    %c0_i32_0 = arith.constant 0 : i32
    %c0_i32_1 = arith.constant 0 : i32
    return %c0_i32, %c0_i32_0 : i32, i32
  }
  func.func @transform_7(%arg0: i32) -> (i32, i32) {
    %c0_i32 = arith.constant 0 : i32
    %c0_i32_0 = arith.constant 0 : i32
    %c0_i32_1 = arith.constant 0 : i32
    return %c0_i32, %c0_i32_0 : i32, i32
  }
  func.func @transform_8(%arg0: i32) -> (i32, i32) {
    %c0_i32 = arith.constant 0 : i32
    %c0_i32_0 = arith.constant 0 : i32
    %c0_i32_1 = arith.constant 0 : i32
    return %c0_i32, %c0_i32_0 : i32, i32
  }
  func.func @transform_9(%arg0: i32) -> (i32, i32) {
    %c0_i32 = arith.constant 0 : i32
    %c0_i32_0 = arith.constant 0 : i32
    %c0_i32_1 = arith.constant 0 : i32
    return %c0_i32, %c0_i32_0 : i32, i32
  }
  func.func @transform_10(%arg0: i32) -> (i32, i32, i32) {
    %c0_i32 = arith.constant 0 : i32
    %c0_i32_0 = arith.constant 0 : i32
    %c0_i32_1 = arith.constant 0 : i32
    return %arg0, %c0_i32, %c0_i32_0 : i32, i32, i32
  }
}

</mosaic_0001>

<bundles_post_ra>
// kernel: frame_encoder_forward.1
= control target key start
LH: loop header
LB: loop body
LE: loop exit
PB: predicated region body
PF: predicated region fallthrough
CT: control target
= control target key end

     0   :  { %s3835_s13 = smov 0   ;;  %s5868_s0 = inlined_call_operand.vmem [shape: f32[2,4,1024], index: 0, kind: input, shape index: {}]   ;;  %s5869_s1 = inlined_call_operand.vmem [shape: f32[1024,32], index: 1, kind: input, shape index: {}]   ;;  %s5870_s2 = inlined_call_operand.vmem [shape: f32[32,1024], index: 2, kind: input, shape index: {}]   ;;  %s5871_s3 = inlined_call_operand.vmem [shape: f32[4,1024], index: 3, kind: input, shape index: {}]   ;;  %s5872_s4 = inlined_call_operand.vmem [shape: f32[4,1024], index: 4, kind: input, shape index: {}]   ;;  %s5873_s5 = inlined_call_operand.vmem [shape: f32[1,1024], index: 5, kind: input, shape index: {}]   ;;  %s5874_s6 = inlined_call_operand.vmem [shape: bf16[8,40], index: 6, kind: input, shape index: {}]   ;;  %s5875_s7 = inlined_call_operand.vmem [shape: f32[8,1], index: 7, kind: input, shape index: {}]   ;;  %s5876_s8 = inlined_call_operand.vmem [shape: bf16[8,80], index: 8, kind: input, shape index: {}]   ;;  %s5877_s9 = inlined_call_operand.vmem [shape: f32[8,1], index: 9, kind: input, shape index: {}]   ;;  %s5878_s10 = inlined_call_operand.vmem [shape: f32[2,8,1024], index: 10, kind: output, shape index: {}]  }
   0x1 LB: > { %s3028_s14 = sadd.s32 4294967295, %s3766_s13   ;;  %p3032_p0 = scmp.ge.s32.totalorder %s3766_s13, 1  ;;  %s3766_s13 = sphi %s3835_s13, %s20_s13  }
   0x2   : > { %p312_p1 = scmp.lt.s32.totalorder %s3766_s13, 3 }
   0x4   : > { %p313_p2 = pnand %p3032_p0, %p312_p1 }
   0x6   : > { %316 = sbr.rel (%p313_p2) target bundleno = 1602 (0x642), region = 60 }
   0xb   : > { %v3846_v0 = vld [vmem:[%s5869_s1 + $0xf8] sm:$0xff]  ;;  %v3868_v4 = vld [vmem:[%s5869_s1 + $0xf0] sm:$0xff]  ;;  %v3890_v8 = vld [vmem:[%s5869_s1 + $0xe8] sm:$0xff]  ;;  %p4007_p3 = scmp.lt.s32.totalorder %s3028_s14, 1  ;;  %vm1120_vm0 = vcmask 261120   ;;  %s3769_s30 = smov 33  }
   0xc   : > { %v3851_v1 = vld [vmem:[%s5869_s1 + $0x1f8] sm:$0xff]  ;;  %3089 = vmatprep.subr.mxu0 %v3846_v0  ;;  %v3873_v5 = vld [vmem:[%s5869_s1 + $0x1f0] sm:$0xff]  ;;  %v3897_v9 = vld [vmem:[%s5869_s1 + $0x1e8] sm:$0xff]  ;;  %vm1820_vm1 = vcmask 269312   ;;  %s3770_s11 = smov 62   ;;  %s3771_s15 = smov 95  }
   0xd   : > { %v3856_v2 = vld [vmem:[%s5869_s1 + $0x78] sm:$0xff]  ;;  %3124 = vmatprep.subr.mxu1 %v3851_v1  ;;  %v3880_v6 = vld [vmem:[%s5869_s1 + $0x70] sm:$0xff]  ;;  %v3902_v10 = vld [vmem:[%s5869_s1 + $0x68] sm:$0xff]  ;;  %s6105_s14 = smov (!%p4007_p3, %s3028_s14), 1  ;;  %s3772_s16 = smov 64   ;;  %vm2113_vm2 = vcmask 506880  }
   0xe   : > { %v3863_v3 = vld [vmem:[%s5869_s1 + $0x178] sm:$0xff]  ;;  %3090 = vmatpush3.msra.mxu0 %v3856_v2  ;;  %v3885_v7 = vld [vmem:[%s5869_s1 + $0x170] sm:$0xff]  ;;  %v3907_v11 = vld [vmem:[%s5869_s1 + $0x168] sm:$0xff]  ;;  %s3087_s12 = sshll.u32 %s6105_s14, 5  ;;  %s3774_s18 = smov 94   ;;  %vm2130_vm3 = vcmask 1043456  }
   0xf   : > { %3125 = vmatpush3.msra.mxu1 %v3863_v3  ;;  %3091 = vmatprep.subr.mxu0 %v3868_v4  ;;  %v3914_v12 = vld [vmem:[%s5869_s1 + $0xe0] sm:$0xff]  ;;  %v3938_v16 = vld [vmem:[%s5869_s1 + $0xd8] sm:$0xff]  ;;  %v3962_v20 = vld [vmem:[%s5869_s1 + $0xd0] sm:$0xff]  ;;  %s4153_s29 = scalar_lea.vmem %s5868_s0, %s3087_s12  ;;  %s3773_s12 = smov 126   ;;  %vm2008_vm4 = vcmask 769024   ;;  %vm2043_vm5 = vcmask 523264  }
  0x10   : > { %3126 = vmatprep.subr.mxu1 %v3873_v5  ;;  %3092 = vmatpush3.msra.mxu0 %v3880_v6  ;;  %v3919_v13 = vld [vmem:[%s5869_s1 + $0x1e0] sm:$0xff]  ;;  %v3943_v17 = vld [vmem:[%s5869_s1 + $0x1d8] sm:$0xff]  ;;  %v3967_v21 = vld [vmem:[%s5869_s1 + $0x1d0] sm:$0xff]  ;;  %s3775_s19 = smov 63   ;;  %s3776_s20 = smov 127   ;;  %vm2078_vm6 = vcmask 515072  }
  0x11   : > { %3127 = vmatpush3.msra.mxu1 %v3885_v7  ;;  %3093 = vmatprep.subr.mxu0 %v3890_v8  ;;  %v3926_v14 = vld [vmem:[%s5869_s1 + $0x60] sm:$0xff]  ;;  %v3950_v18 = vld [vmem:[%s5869_s1 + $0x58] sm:$0xff]  ;;  %v3974_v22 = vld [vmem:[%s5869_s1 + $0x50] sm:$0xff]  ;;  %s3777_s17 = smov 96   ;;  %vm1973_vm7 = vcmask 777216   ;;  %vm1868_vm8 = vcmask 1039360  }
  0x12   : > { %3128 = vmatprep.subr.mxu1 %v3897_v9  ;;  %v3931_v15 = vld [vmem:[%s5869_s1 + $0x160] sm:$0xff]  ;;  %3094 = vmatpush3.msra.mxu0 %v3902_v10  ;;  %v3955_v19 = vld [vmem:[%s5869_s1 + $0x158] sm:$0xff]  ;;  %v3979_v23 = vld [vmem:[%s5869_s1 + $0x150] sm:$0xff]  ;;  %vm1903_vm9 = vcmask 1031168   ;;  %vm1938_vm10 = vcmask 785408   ;;  %vm2202_vm11 = vcmask 326656  }
  0x13   : > { %3129 = vmatpush3.msra.mxu1 %v3907_v11  ;;  %3095 = vmatprep.subr.mxu0 %v3914_v12  ;;  %v3986_v24 = vld [vmem:[%s5869_s1 + $0xc8] sm:$0xff]  ;;  %v4016_v28 = vld [vmem:[%s5869_s1 + $0xc0] sm:$0xff]  ;;  %v4040_v32 = vld [vmem:[%s5869_s1 + $0xb8] sm:$0xff]  ;;  %vm3779_vm12 = vmmov 1   ;;  %vm2797_vm14 = vcmask 654336  }
  0x14   : > { %3130 = vmatprep.subr.mxu1 %v3919_v13  ;;  %3096 = vmatpush3.msra.mxu0 %v3926_v14  ;;  %v3991_v25 = vld [vmem:[%s5869_s1 + $0x1c8] sm:$0xff]  ;;  %v4021_v29 = vld [vmem:[%s5869_s1 + $0x1c0] sm:$0xff]  ;;  %v4045_v33 = vld [vmem:[%s5869_s1 + $0x1b8] sm:$0xff] }
  0x15   : > { %3131 = vmatpush3.msra.mxu1 %v3931_v15  ;;  %3097 = vmatprep.subr.mxu0 %v3938_v16  ;;  %v3998_v26 = vld [vmem:[%s5869_s1 + $0x48] sm:$0xff]  ;;  %v4028_v30 = vld [vmem:[%s5869_s1 + $0x40] sm:$0xff]  ;;  %v4052_v34 = vld [vmem:[%s5869_s1 + $0x38] sm:$0xff] }
  0x16   : > { %3132 = vmatprep.subr.mxu1 %v3943_v17  ;;  %3098 = vmatpush3.msra.mxu0 %v3950_v18  ;;  %v4003_v27 = vld [vmem:[%s5869_s1 + $0x148] sm:$0xff]  ;;  %v4033_v31 = vld [vmem:[%s5869_s1 + $0x140] sm:$0xff]  ;;  %v4057_v35 = vld [vmem:[%s5869_s1 + $0x138] sm:$0xff] }
  0x17   : > { %3133 = vmatpush3.msra.mxu1 %v3955_v19  ;;  %3099 = vmatprep.subr.mxu0 %v3962_v20  ;;  %v4070_v36 = vld [vmem:[%s5869_s1 + $0xb0] sm:$0xff]  ;;  %v4094_v40 = vld [vmem:[%s5869_s1 + $0xa8] sm:$0xff]  ;;  %v4119_v44 = vld [vmem:[%s5869_s1 + $0xa0] sm:$0xff] }
  0x18   : > { %3134 = vmatprep.subr.mxu1 %v3967_v21  ;;  %3100 = vmatpush3.msra.mxu0 %v3974_v22  ;;  %v4075_v37 = vld [vmem:[%s5869_s1 + $0x1b0] sm:$0xff]  ;;  %v4099_v41 = vld [vmem:[%s5869_s1 + $0x1a8] sm:$0xff]  ;;  %v4124_v45 = vld [vmem:[%s5869_s1 + $0x1a0] sm:$0xff] }
  0x19   : > { %3135 = vmatpush3.msra.mxu1 %v3979_v23  ;;  %3101 = vmatprep.subr.mxu0 %v3986_v24  ;;  %v4082_v38 = vld [vmem:[%s5869_s1 + $0x30] sm:$0xff]  ;;  %v4106_v42 = vld [vmem:[%s5869_s1 + $0x28] sm:$0xff]  ;;  %v4131_v46 = vld [vmem:[%s5869_s1 + $0x20] sm:$0xff] }
  0x1a   : > { %3136 = vmatprep.subr.mxu1 %v3991_v25  ;;  %3102 = vmatpush3.msra.mxu0 %v3998_v26  ;;  %v4087_v39 = vld [vmem:[%s5869_s1 + $0x130] sm:$0xff]  ;;  %v4111_v43 = vld [vmem:[%s5869_s1 + $0x128] sm:$0xff]  ;;  %v4136_v47 = vld [vmem:[%s5869_s1 + $0x120] sm:$0xff] }
  0x1b   : > { %3137 = vmatpush3.msra.mxu1 %v4003_v27  ;;  %3103 = vmatprep.subr.mxu0 %v4016_v28  ;;  %v4143_v48 = vld [vmem:[%s5869_s1 + $0x98] sm:$0xff]  ;;  %v4172_v52 = vld [vmem:[%s5869_s1 + $0x90] sm:$0xff]  ;;  %v4192_v56 = vld [vmem:[%s4153_s29] sm:$0xff] }
  0x1c   : > { %3138 = vmatprep.subr.mxu1 %v4021_v29  ;;  %3104 = vmatpush3.msra.mxu0 %v4028_v30  ;;  %v4148_v49 = vld [vmem:[%s5869_s1 + $0x198] sm:$0xff]  ;;  %5957 = vst [vmem:[#allocation4_spill] sm:$0xff] %v4172_v52  ;;  %v4177_v53 = vld [vmem:[%s5869_s1 + $0x190] sm:$0xff]  ;;  %v4199_v57 = vld [vmem:[%s5869_s1 + $0x88] sm:$0xff] }
  0x1d   : > { %3139 = vmatpush3.msra.mxu1 %v4033_v31  ;;  %3105 = vmatprep.subr.mxu0 %v4040_v32  ;;  %v4160_v50 = vld [vmem:[%s5869_s1 + $0x18] sm:$0xff]  ;;  %5958 = vst [vmem:[#allocation5_spill] sm:$0xff] %v4177_v53  ;;  %v4184_v54 = vld [vmem:[%s5869_s1 + $0x10] sm:$0xff]  ;;  %5961 = vst [vmem:[#allocation8_spill] sm:$0xff] %v4199_v57 }
  0x1e   : > { %3140 = vmatprep.subr.mxu1 %v4045_v33  ;;  %3106 = vmatpush3.msra.mxu0 %v4052_v34  ;;  %5955 = vst [vmem:[#allocation2_spill] sm:$0xff] %v4160_v50  ;;  %v4165_v51 = vld [vmem:[%s5869_s1 + $0x118] sm:$0xff]  ;;  %5959 = vst [vmem:[#allocation6_spill] sm:$0xff] %v4184_v54  ;;  %v4189_v55 = vld [vmem:[%s5869_s1 + $0x110] sm:$0xff] }
  0x1f   : > { %3141 = vmatpush3.msra.mxu1 %v4057_v35  ;;  %3107 = vmatprep.subr.mxu0 %v4070_v36  ;;  %5956 = vst [vmem:[#allocation3_spill] sm:$0xff] %v4165_v51  ;;  %5960 = vst [vmem:[#allocation7_spill] sm:$0xff] %v4189_v55  ;;  %v4204_v58 = vld [vmem:[%s5869_s1 + $0x188] sm:$0xff]  ;;  %v4226_v62 = vld [vmem:[%s5869_s1 + $0x80] sm:$0xff] }
  0x20   : > { %3142 = vmatprep.subr.mxu1 %v4075_v37  ;;  %3108 = vmatpush3.msra.mxu0 %v4082_v38  ;;  %5962 = vst [vmem:[#allocation9_spill] sm:$0xff] %v4204_v58  ;;  %v4207_v59 = vld [vmem:[%s4153_s29 + $0x8] sm:$0xff]  ;;  %5965 = vst [vmem:[#allocation12_spill] sm:$0xff] %v4226_v62  ;;  %v4231_v63 = vld [vmem:[%s5869_s1 + $0x180] sm:$0xff] }
  0x21   : > { %3143 = vmatpush3.msra.mxu1 %v4087_v39  ;;  %3109 = vmatprep.subr.mxu0 %v4094_v40  ;;  %v4214_v60 = vld [vmem:[%s5869_s1 + $0x8] sm:$0xff]  ;;  %5966 = vst [vmem:[#allocation13_spill] sm:$0xff] %v4231_v63  ;;  %vm5598_vm13 = vmpackc.low %vm2130_vm3, %vm3779_vm12 }
  0x22   : > { %3144 = vmatprep.subr.mxu1 %v4099_v41  ;;  %3110 = vmatpush3.msra.mxu0 %v4106_v42  ;;  %5963 = vst [vmem:[#allocation10_spill] sm:$0xff] %v4214_v60  ;;  %v4219_v61 = vld [vmem:[%s5869_s1 + $0x108] sm:$0xff]  ;;  %vm3059_vm15 = vmneg %vm1820_vm1 }
  0x23   : > { %3145 = vmatpush3.msra.mxu1 %v4111_v43  ;;  %3111 = vmatprep.subr.mxu0 %v4119_v44  ;;  %5964 = vst [vmem:[#allocation11_spill] sm:$0xff] %v4219_v61 }
  0x24   : > { %3146 = vmatprep.subr.mxu1 %v4124_v45  ;;  %3112 = vmatpush3.msra.mxu0 %v4131_v46 }
  0x25   : > { %3147 = vmatpush3.msra.mxu1 %v4136_v47  ;;  %3113 = vmatprep.subr.mxu0 %v4143_v48 }
  0x26   : > { %3148 = vmatprep.subr.mxu1 %v4148_v49  ;;  %3114 = vmatpush3.msra.mxu0 %v4160_v50 }
  0x27   : > { %3149 = vmatpush3.msra.mxu1 %v4165_v51  ;;  %3115 = vmatprep.subr.mxu0 %v4172_v52  ;;  %v4253_v52 = vld [vmem:[%s5869_s1 + $0x100] sm:$0xff] }
  0x28   : > { %3150 = vmatprep.subr.mxu1 %v4177_v53  ;;  %3116 = vmatpush3.msra.mxu0 %v4184_v54  ;;  %v4235_v53 = vcombine.high %v4192_v56, %v4192_v56  ;;  %v4246_v54 = vcombine.high %v4207_v59, %v4207_v59  ;;  %5970 = vst [vmem:[#allocation17_spill] sm:$0xff] %v4253_v52 }
  0x29   : > { %3151 = vmatpush3.msra.mxu1 %v4189_v55  ;;  %3117 = vmatprep.subr.mxu0 %v4199_v57  ;;  %v4242_v55 = vld [vmem:[%s5869_s1] sm:$0xff]  ;;  %v4621_v57 = vld [vmem:[%s4153_s29 + $0x18] sm:$0xff] }
  0x2a   : > { %5967 = vst [vmem:[#allocation14_spill] sm:$0xff] %v4235_v53  ;;  %3152 = vmatprep.subr.mxu1 %v4204_v58  ;;  %5968 = vst [vmem:[#allocation15_spill] sm:$0xff] %v4242_v55  ;;  %3118 = vmatpush3.msra.mxu0 %v4214_v60  ;;  %v4262_v58 = vld [vmem:[%s5869_s1 + $0x2f8] sm:$0xff]  ;;  %v4594_v60 = vld [vmem:[%s4153_s29 + $0x10] sm:$0xff]  ;;  %v4655_v50 = vcombine.high %v4621_v57, %v4621_v57 }
  0x2b   : > { %5969 = vst [vmem:[#allocation16_spill] sm:$0xff] %v4246_v54  ;;  %3153 = vmatpush3.msra.mxu1 %v4219_v61  ;;  %3119 = vmatprep.subr.mxu0 %v4226_v62  ;;  %5971 = vst [vmem:[#allocation18_spill] sm:$0xff] %v4262_v58  ;;  %v4267_v61 = vld [vmem:[%s5869_s1 + $0x3f8] sm:$0xff]  ;;  %v4303_v62 = vld [vmem:[%s5869_s1 + $0x370] sm:$0xff]  ;;  %v4637_v51 = vcombine.high %v4594_v60, %v4594_v60 }
  0x2c   : > { %3154 = vmatprep.subr.mxu1 %v4231_v63  ;;  %3120 = vmatpush3.msra.mxu0 %v4242_v55  ;;  %5972 = vst [vmem:[#allocation19_spill] sm:$0xff] %v4267_v61  ;;  %v4274_v55 = vld [vmem:[%s5869_s1 + $0x278] sm:$0xff]  ;;  %v4298_v63 = vld [vmem:[%s5869_s1 + $0x270] sm:$0xff]  ;;  %5978 = vst [vmem:[#allocation25_spill] sm:$0xff] %v4303_v62 }
  0x2d   : > { %570 = vmatprep.mubr.f32.mxu0 %v4235_v53  ;;  %3155 = vmatpush3.msra.mxu1 %v4253_v52  ;;  %5973 = vst [vmem:[#allocation20_spill] sm:$0xff] %v4274_v55  ;;  %v4279_v53 = vld [vmem:[%s5869_s1 + $0x378] sm:$0xff]  ;;  %v4286_v52 = vld [vmem:[%s5869_s1 + $0x2f0] sm:$0xff]  ;;  %5977 = vst [vmem:[#allocation24_spill] sm:$0xff] %v4298_v63 }
  0x2e   : > { %640 = vmatprep.mubr.f32.mxu1 %v4246_v54  ;;  %5974 = vst [vmem:[#allocation21_spill] sm:$0xff] %v4279_v53  ;;  %571 = vmatmul.mubr.f32.vlgmr.msra.gmra.mxu0 %v4192_v56  ;;  %5975 = vst [vmem:[#allocation22_spill] sm:$0xff] %v4286_v52  ;;  %v4291_v54 = vld [vmem:[%s5869_s1 + $0x3f0] sm:$0xff] }
  0x2f   : > { %641 = vmatmul.mubr.f32.vlgmr.msra.gmra.mxu1 %v4207_v59  ;;  %5976 = vst [vmem:[#allocation23_spill] sm:$0xff] %v4291_v54  ;;  %3159 = vmatprep.subr.mxu0 %v4262_v58  ;;  %v4310_v58 = vld [vmem:[%s5869_s1 + $0x2e8] sm:$0xff] }
  0x30   : > { %3194 = vmatprep.subr.mxu1 %v4267_v61  ;;  %3160 = vmatpush3.msra.mxu0 %v4274_v55  ;;  %5979 = vst [vmem:[#allocation26_spill] sm:$0xff] %v4310_v58  ;;  %v4315_v61 = vld [vmem:[%s5869_s1 + $0x3e8] sm:$0xff] }
  0x31   : > { %3195 = vmatpush3.msra.mxu1 %v4279_v53  ;;  %5980 = vst [vmem:[#allocation27_spill] sm:$0xff] %v4315_v61  ;;  %3161 = vmatprep.subr.mxu0 %v4286_v52  ;;  %v4322_v55 = vld [vmem:[%s5869_s1 + $0x268] sm:$0xff]  ;;  %v4334_v52 = vld [vmem:[%s5869_s1 + $0x2e0] sm:$0xff] }
  0x32   : > { %3196 = vmatprep.subr.mxu1 %v4291_v54  ;;  %5981 = vst [vmem:[#allocation28_spill] sm:$0xff] %v4322_v55  ;;  %v4327_v53 = vld [vmem:[%s5869_s1 + $0x368] sm:$0xff]  ;;  %3162 = vmatpush3.msra.mxu0 %v4298_v63  ;;  %5983 = vst [vmem:[#allocation30_spill] sm:$0xff] %v4334_v52  ;;  %v4339_v54 = vld [vmem:[%s5869_s1 + $0x3e0] sm:$0xff] }
  0x33   : > { %5982 = vst [vmem:[#allocation29_spill] sm:$0xff] %v4327_v53  ;;  %3197 = vmatpush3.msra.mxu1 %v4303_v62  ;;  %5984 = vst [vmem:[#allocation31_spill] sm:$0xff] %v4339_v54  ;;  %3163 = vmatprep.subr.mxu0 %v4310_v58  ;;  %v4346_v63 = vld [vmem:[%s5869_s1 + $0x260] sm:$0xff]  ;;  %v4358_v58 = vld [vmem:[%s5869_s1 + $0x2d8] sm:$0xff] }
  0x34   : > { %3198 = vmatprep.subr.mxu1 %v4315_v61  ;;  %5985 = vst [vmem:[#allocation32_spill] sm:$0xff] %v4346_v63  ;;  %v4351_v62 = vld [vmem:[%s5869_s1 + $0x360] sm:$0xff]  ;;  %3164 = vmatpush3.msra.mxu0 %v4322_v55  ;;  %5987 = vst [vmem:[#allocation34_spill] sm:$0xff] %v4358_v58  ;;  %v4363_v61 = vld [vmem:[%s5869_s1 + $0x3d8] sm:$0xff] }
  0x35   : > { %5986 = vst [vmem:[#allocation33_spill] sm:$0xff] %v4351_v62  ;;  %3199 = vmatpush3.msra.mxu1 %v4327_v53  ;;  %5988 = vst [vmem:[#allocation35_spill] sm:$0xff] %v4363_v61  ;;  %3165 = vmatprep.subr.mxu0 %v4334_v52  ;;  %v4370_v55 = vld [vmem:[%s5869_s1 + $0x258] sm:$0xff]  ;;  %v4382_v52 = vld [vmem:[%s5869_s1 + $0x2d0] sm:$0xff] }
  0x36   : > { %3200 = vmatprep.subr.mxu1 %v4339_v54  ;;  %5989 = vst [vmem:[#allocation36_spill] sm:$0xff] %v4370_v55  ;;  %v4375_v53 = vld [vmem:[%s5869_s1 + $0x358] sm:$0xff]  ;;  %3166 = vmatpush3.msra.mxu0 %v4346_v63  ;;  %5991 = vst [vmem:[#allocation38_spill] sm:$0xff] %v4382_v52  ;;  %v4387_v54 = vld [vmem:[%s5869_s1 + $0x3d0] sm:$0xff] }
  0x37   : > { %5990 = vst [vmem:[#allocation37_spill] sm:$0xff] %v4375_v53  ;;  %3201 = vmatpush3.msra.mxu1 %v4351_v62  ;;  %5992 = vst [vmem:[#allocation39_spill] sm:$0xff] %v4387_v54  ;;  %3167 = vmatprep.subr.mxu0 %v4358_v58  ;;  %v4394_v63 = vld [vmem:[%s5869_s1 + $0x250] sm:$0xff]  ;;  %v4406_v58 = vld [vmem:[%s5869_s1 + $0x2c8] sm:$0xff] }
  0x38   : > { %3202 = vmatprep.subr.mxu1 %v4363_v61  ;;  %5993 = vst [vmem:[#allocation40_spill] sm:$0xff] %v4394_v63  ;;  %v4399_v62 = vld [vmem:[%s5869_s1 + $0x350] sm:$0xff]  ;;  %3168 = vmatpush3.msra.mxu0 %v4370_v55  ;;  %5995 = vst [vmem:[#allocation42_spill] sm:$0xff] %v4406_v58  ;;  %v4411_v61 = vld [vmem:[%s5869_s1 + $0x3c8] sm:$0xff] }
  0x39   : > { %5994 = vst [vmem:[#allocation41_spill] sm:$0xff] %v4399_v62  ;;  %3203 = vmatpush3.msra.mxu1 %v4375_v53  ;;  %5996 = vst [vmem:[#allocation43_spill] sm:$0xff] %v4411_v61  ;;  %3169 = vmatprep.subr.mxu0 %v4382_v52  ;;  %v4418_v55 = vld [vmem:[%s5869_s1 + $0x248] sm:$0xff]  ;;  %v4430_v52 = vld [vmem:[%s5869_s1 + $0x2c0] sm:$0xff] }
  0x3a   : > { %3204 = vmatprep.subr.mxu1 %v4387_v54  ;;  %5997 = vst [vmem:[#allocation44_spill] sm:$0xff] %v4418_v55  ;;  %v4423_v53 = vld [vmem:[%s5869_s1 + $0x348] sm:$0xff]  ;;  %3170 = vmatpush3.msra.mxu0 %v4394_v63  ;;  %5999 = vst [vmem:[#allocation46_spill] sm:$0xff] %v4430_v52  ;;  %v4435_v54 = vld [vmem:[%s5869_s1 + $0x3c0] sm:$0xff] }
  0x3b   : > { %5998 = vst [vmem:[#allocation45_spill] sm:$0xff] %v4423_v53  ;;  %3205 = vmatpush3.msra.mxu1 %v4399_v62  ;;  %6000 = vst [vmem:[#allocation47_spill] sm:$0xff] %v4435_v54  ;;  %3171 = vmatprep.subr.mxu0 %v4406_v58  ;;  %v4442_v63 = vld [vmem:[%s5869_s1 + $0x240] sm:$0xff]  ;;  %v4454_v58 = vld [vmem:[%s5869_s1 + $0x2b8] sm:$0xff] }
  0x3c   : > { %3206 = vmatprep.subr.mxu1 %v4411_v61  ;;  %6001 = vst [vmem:[#allocation48_spill] sm:$0xff] %v4442_v63  ;;  %v4447_v62 = vld [vmem:[%s5869_s1 + $0x340] sm:$0xff]  ;;  %3172 = vmatpush3.msra.mxu0 %v4418_v55  ;;  %6003 = vst [vmem:[#allocation50_spill] sm:$0xff] %v4454_v58  ;;  %v4459_v61 = vld [vmem:[%s5869_s1 + $0x3b8] sm:$0xff] }
  0x3d   : > { %6002 = vst [vmem:[#allocation49_spill] sm:$0xff] %v4447_v62  ;;  %3207 = vmatpush3.msra.mxu1 %v4423_v53  ;;  %6004 = vst [vmem:[#allocation51_spill] sm:$0xff] %v4459_v61  ;;  %3173 = vmatprep.subr.mxu0 %v4430_v52  ;;  %v4466_v55 = vld [vmem:[%s5869_s1 + $0x238] sm:$0xff]  ;;  %v4478_v52 = vld [vmem:[%s5869_s1 + $0x2b0] sm:$0xff] }
  0x3e   : > { %3208 = vmatprep.subr.mxu1 %v4435_v54  ;;  %6005 = vst [vmem:[#allocation52_spill] sm:$0xff] %v4466_v55  ;;  %v4471_v53 = vld [vmem:[%s5869_s1 + $0x338] sm:$0xff]  ;;  %3174 = vmatpush3.msra.mxu0 %v4442_v63  ;;  %6007 = vst [vmem:[#allocation54_spill] sm:$0xff] %v4478_v52  ;;  %v4483_v54 = vld [vmem:[%s5869_s1 + $0x3b0] sm:$0xff] }
  0x3f   : > { %6006 = vst [vmem:[#allocation53_spill] sm:$0xff] %v4471_v53  ;;  %3209 = vmatpush3.msra.mxu1 %v4447_v62  ;;  %6008 = vst [vmem:[#allocation55_spill] sm:$0xff] %v4483_v54  ;;  %3175 = vmatprep.subr.mxu0 %v4454_v58  ;;  %v4490_v63 = vld [vmem:[%s5869_s1 + $0x230] sm:$0xff]  ;;  %v4502_v58 = vld [vmem:[%s5869_s1 + $0x2a8] sm:$0xff] }
  0x40   : > { %3210 = vmatprep.subr.mxu1 %v4459_v61  ;;  %6009 = vst [vmem:[#allocation56_spill] sm:$0xff] %v4490_v63  ;;  %v4495_v62 = vld [vmem:[%s5869_s1 + $0x330] sm:$0xff]  ;;  %3176 = vmatpush3.msra.mxu0 %v4466_v55  ;;  %6011 = vst [vmem:[#allocation58_spill] sm:$0xff] %v4502_v58  ;;  %v4507_v61 = vld [vmem:[%s5869_s1 + $0x3a8] sm:$0xff] }
  0x41   : > { %6010 = vst [vmem:[#allocation57_spill] sm:$0xff] %v4495_v62  ;;  %3211 = vmatpush3.msra.mxu1 %v4471_v53  ;;  %6012 = vst [vmem:[#allocation59_spill] sm:$0xff] %v4507_v61  ;;  %3177 = vmatprep.subr.mxu0 %v4478_v52  ;;  %v4514_v55 = vld [vmem:[%s5869_s1 + $0x228] sm:$0xff]  ;;  %v4526_v52 = vld [vmem:[%s5869_s1 + $0x2a0] sm:$0xff] }
  0x42   : > { %3212 = vmatprep.subr.mxu1 %v4483_v54  ;;  %6013 = vst [vmem:[#allocation60_spill] sm:$0xff] %v4514_v55  ;;  %v4519_v53 = vld [vmem:[%s5869_s1 + $0x328] sm:$0xff]  ;;  %3178 = vmatpush3.msra.mxu0 %v4490_v63  ;;  %6015 = vst [vmem:[#allocation62_spill] sm:$0xff] %v4526_v52  ;;  %v4531_v54 = vld [vmem:[%s5869_s1 + $0x3a0] sm:$0xff] }
  0x43   : > { %6014 = vst [vmem:[#allocation61_spill] sm:$0xff] %v4519_v53  ;;  %3213 = vmatpush3.msra.mxu1 %v4495_v62  ;;  %6016 = vst [vmem:[#allocation63_spill] sm:$0xff] %v4531_v54  ;;  %3179 = vmatprep.subr.mxu0 %v4502_v58  ;;  %v4538_v63 = vld [vmem:[%s5869_s1 + $0x220] sm:$0xff]  ;;  %v4550_v58 = vld [vmem:[%s5869_s1 + $0x298] sm:$0xff] }
  0x44   : > { %3214 = vmatprep.subr.mxu1 %v4507_v61  ;;  %6017 = vst [vmem:[#allocation64_spill] sm:$0xff] %v4538_v63  ;;  %v4543_v62 = vld [vmem:[%s5869_s1 + $0x320] sm:$0xff]  ;;  %3180 = vmatpush3.msra.mxu0 %v4514_v55  ;;  %6019 = vst [vmem:[#allocation66_spill] sm:$0xff] %v4550_v58  ;;  %v4555_v61 = vld [vmem:[%s5869_s1 + $0x398] sm:$0xff] }
  0x45   : > { %6018 = vst [vmem:[#allocation65_spill] sm:$0xff] %v4543_v62  ;;  %3215 = vmatpush3.msra.mxu1 %v4519_v53  ;;  %6020 = vst [vmem:[#allocation67_spill] sm:$0xff] %v4555_v61  ;;  %3181 = vmatprep.subr.mxu0 %v4526_v52  ;;  %v4562_v55 = vld [vmem:[%s5869_s1 + $0x218] sm:$0xff]  ;;  %v4574_v52 = vld [vmem:[%s5869_s1 + $0x290] sm:$0xff] }
  0x46   : > { %3216 = vmatprep.subr.mxu1 %v4531_v54  ;;  %6021 = vst [vmem:[#allocation68_spill] sm:$0xff] %v4562_v55  ;;  %v4567_v53 = vld [vmem:[%s5869_s1 + $0x318] sm:$0xff]  ;;  %3182 = vmatpush3.msra.mxu0 %v4538_v63  ;;  %6023 = vst [vmem:[#allocation70_spill] sm:$0xff] %v4574_v52  ;;  %v4579_v54 = vld [vmem:[%s5869_s1 + $0x390] sm:$0xff] }
  0x47   : > { %6022 = vst [vmem:[#allocation69_spill] sm:$0xff] %v4567_v53  ;;  %3217 = vmatpush3.msra.mxu1 %v4543_v62  ;;  %6024 = vst [vmem:[#allocation71_spill] sm:$0xff] %v4579_v54  ;;  %3183 = vmatprep.subr.mxu0 %v4550_v58  ;;  %v4586_v63 = vld [vmem:[%s5869_s1 + $0x210] sm:$0xff]  ;;  %v4606_v58 = vld [vmem:[%s5869_s1 + $0x388] sm:$0xff] }
  0x48   : > { %3218 = vmatprep.subr.mxu1 %v4555_v61  ;;  %6025 = vst [vmem:[#allocation72_spill] sm:$0xff] %v4586_v63  ;;  %v4591_v62 = vld [vmem:[%s5869_s1 + $0x310] sm:$0xff]  ;;  %3184 = vmatpush3.msra.mxu0 %v4562_v55  ;;  %v4601_v61 = vld [vmem:[%s5869_s1 + $0x288] sm:$0xff] }
  0x49   : > { %6026 = vst [vmem:[#allocation73_spill] sm:$0xff] %v4591_v62  ;;  %3219 = vmatpush3.msra.mxu1 %v4567_v53  ;;  %3185 = vmatprep.subr.mxu0 %v4574_v52  ;;  %v4613_v55 = vld [vmem:[%s5869_s1 + $0x208] sm:$0xff]  ;;  %v4633_v52 = vld [vmem:[%s5869_s1 + $0x380] sm:$0xff] }
  0x4a   : > { %3220 = vmatprep.subr.mxu1 %v4579_v54  ;;  %v4618_v53 = vld [vmem:[%s5869_s1 + $0x308] sm:$0xff]  ;;  %3186 = vmatpush3.msra.mxu0 %v4586_v63  ;;  %v4628_v54 = vld [vmem:[%s5869_s1 + $0x280] sm:$0xff] }
  0x4b   : > { %3221 = vmatpush3.msra.mxu1 %v4591_v62  ;;  %3187 = vmatprep.subr.mxu0 %v4601_v61  ;;  %v4644_v62 = vld [vmem:[%s5869_s1 + $0x200] sm:$0xff] }
  0x4c   : > { %3222 = vmatprep.subr.mxu1 %v4606_v58  ;;  %3188 = vmatpush3.msra.mxu0 %v4613_v55  ;;  %v4651_v63 = vld [vmem:[%s5869_s1 + $0x300] sm:$0xff] }
  0x4d   : > { %3223 = vmatpush3.msra.mxu1 %v4618_v53  ;;  %3189 = vmatprep.subr.mxu0 %v4628_v54 }
  0x4e   : > { %3224 = vmatprep.subr.mxu1 %v4633_v52  ;;  %3190 = vmatpush3.msra.mxu0 %v4644_v62 }
  0x4f   : > { %710 = vmatprep.mubr.f32.mxu0 %v4637_v51  ;;  %3225 = vmatpush3.msra.mxu1 %v4651_v63 }
  0x50   : > { %711 = vmatmul.mubr.f32.vlgmr.msra.gmra.mxu0 %v4594_v60  ;;  %780 = vmatprep.mubr.f32.mxu1 %v4655_v50 }
  0x51   : > { %3229 = vmatprep.subr.mxu0 %v3846_v0  ;;  %3264 = vmatprep.subr.mxu1 %v3851_v1  ;;  %v787_v0 = vmul.f32 %v4192_v56, %v4192_v56  ;;  %v788_v1 = vmul.f32 %v4207_v59, %v4207_v59 }
  0x52   : > { %781 = vmatmul.mubr.f32.vlgmr.msra.gmra.mxu1 %v4621_v57  ;;  %3230 = vmatpush3.msra.mxu0 %v3856_v2  ;;  %v6027_v2 = vld [vmem:[#allocation2_spill] sm:$0xff] }
  0x53   : > { %3265 = vmatpush3.msra.mxu1 %v3863_v3  ;;  %3231 = vmatprep.subr.mxu0 %v3868_v4  ;;  %v6028_v3 = vld [vmem:[#allocation3_spill] sm:$0xff]  ;;  %v6029_v4 = vld [vmem:[#allocation4_spill] sm:$0xff] }
  0x54   : > { %3266 = vmatprep.subr.mxu1 %v3873_v5  ;;  %3232 = vmatpush3.msra.mxu0 %v3880_v6  ;;  %v6030_v5 = vld [vmem:[#allocation5_spill] sm:$0xff]  ;;  %v6031_v6 = vld [vmem:[#allocation6_spill] sm:$0xff] }
  0x55   : > { %3267 = vmatpush3.msra.mxu1 %v3885_v7  ;;  %3233 = vmatprep.subr.mxu0 %v3890_v8  ;;  %v6032_v7 = vld [vmem:[#allocation7_spill] sm:$0xff]  ;;  %v795_v8 = vcombine.high %v787_v0, %v787_v0 }
  0x56   : > { %3268 = vmatprep.subr.mxu1 %v3897_v9  ;;  %3234 = vmatpush3.msra.mxu0 %v3902_v10  ;;  %v6033_v9 = vld [vmem:[#allocation8_spill] sm:$0xff]  ;;  %v6034_v10 = vld [vmem:[#allocation9_spill] sm:$0xff] }
  0x57   : > { %3269 = vmatpush3.msra.mxu1 %v3907_v11  ;;  %3235 = vmatprep.subr.mxu0 %v3914_v12  ;;  %v796_v11 = vcombine.high %v788_v1, %v788_v1  ;;  %v6035_v12 = vld [vmem:[#allocation10_spill] sm:$0xff] }
  0x58   : > { %3270 = vmatprep.subr.mxu1 %v3919_v13  ;;  %3236 = vmatpush3.msra.mxu0 %v3926_v14  ;;  %v6036_v13 = vld [vmem:[#allocation11_spill] sm:$0xff]  ;;  %v6037_v14 = vld [vmem:[#allocation12_spill] sm:$0xff] }
  0x59   : > { %3271 = vmatpush3.msra.mxu1 %v3931_v15  ;;  %3237 = vmatprep.subr.mxu0 %v3938_v16  ;;  %v6038_v15 = vld [vmem:[#allocation13_spill] sm:$0xff]  ;;  %v6039_v16 = vld [vmem:[#allocation15_spill] sm:$0xff] }
  0x5a   : > { %3272 = vmatprep.subr.mxu1 %v3943_v17  ;;  %3238 = vmatpush3.msra.mxu0 %v3950_v18  ;;  %v6040_v17 = vld [vmem:[#allocation17_spill] sm:$0xff]  ;;  %v6041_v18 = vld [vmem:[#allocation18_spill] sm:$0xff] }
  0x5b   : > { %3273 = vmatpush3.msra.mxu1 %v3955_v19  ;;  %3239 = vmatprep.subr.mxu0 %v3962_v20  ;;  %v6042_v19 = vld [vmem:[#allocation19_spill] sm:$0xff]  ;;  %v6043_v20 = vld [vmem:[#allocation20_spill] sm:$0xff] }
  0x5c   : > { %3274 = vmatprep.subr.mxu1 %v3967_v21  ;;  %3240 = vmatpush3.msra.mxu0 %v3974_v22  ;;  %v6044_v21 = vld [vmem:[#allocation21_spill] sm:$0xff]  ;;  %v6045_v22 = vld [vmem:[#allocation22_spill] sm:$0xff] }
  0x5d   : > { %3275 = vmatpush3.msra.mxu1 %v3979_v23  ;;  %3241 = vmatprep.subr.mxu0 %v3986_v24  ;;  %v6046_v23 = vld [vmem:[#allocation23_spill] sm:$0xff]  ;;  %v6047_v24 = vld [vmem:[#allocation24_spill] sm:$0xff] }
  0x5e   : > { %3276 = vmatprep.subr.mxu1 %v3991_v25  ;;  %3242 = vmatpush3.msra.mxu0 %v3998_v26  ;;  %v6048_v25 = vld [vmem:[#allocation25_spill] sm:$0xff]  ;;  %v6049_v26 = vld [vmem:[#allocation26_spill] sm:$0xff] }
  0x5f   : > { %3277 = vmatpush3.msra.mxu1 %v4003_v27  ;;  %3243 = vmatprep.subr.mxu0 %v4016_v28  ;;  %v6050_v27 = vld [vmem:[#allocation27_spill] sm:$0xff]  ;;  %v6051_v28 = vld [vmem:[#allocation28_spill] sm:$0xff] }
  0x60   : > { %3278 = vmatprep.subr.mxu1 %v4021_v29  ;;  %3244 = vmatpush3.msra.mxu0 %v4028_v30  ;;  %v6052_v29 = vld [vmem:[#allocation29_spill] sm:$0xff]  ;;  %v6053_v30 = vld [vmem:[#allocation30_spill] sm:$0xff] }
  0x61   : > { %3279 = vmatpush3.msra.mxu1 %v4033_v31  ;;  %3245 = vmatprep.subr.mxu0 %v4040_v32  ;;  %v6054_v31 = vld [vmem:[#allocation31_spill] sm:$0xff]  ;;  %v6055_v32 = vld [vmem:[#allocation32_spill] sm:$0xff] }
  0x62   : > { %3280 = vmatprep.subr.mxu1 %v4045_v33  ;;  %3246 = vmatpush3.msra.mxu0 %v4052_v34  ;;  %v6056_v33 = vld [vmem:[#allocation33_spill] sm:$0xff]  ;;  %v6057_v34 = vld [vmem:[#allocation34_spill] sm:$0xff] }
  0x63   : > { %3281 = vmatpush3.msra.mxu1 %v4057_v35  ;;  %3247 = vmatprep.subr.mxu0 %v4070_v36  ;;  %v6058_v35 = vld [vmem:[#allocation35_spill] sm:$0xff]  ;;  %v6059_v36 = vld [vmem:[#allocation36_spill] sm:$0xff] }
  0x64   : > { %3282 = vmatprep.subr.mxu1 %v4075_v37  ;;  %3248 = vmatpush3.msra.mxu0 %v4082_v38  ;;  %v6060_v37 = vld [vmem:[#allocation37_spill] sm:$0xff]  ;;  %v6061_v38 = vld [vmem:[#allocation38_spill] sm:$0xff] }
  0x65   : > { %3283 = vmatpush3.msra.mxu1 %v4087_v39  ;;  %3249 = vmatprep.subr.mxu0 %v4094_v40  ;;  %v6062_v39 = vld [vmem:[#allocation39_spill] sm:$0xff]  ;;  %v6063_v40 = vld [vmem:[#allocation40_spill] sm:$0xff] }
  0x66   : > { %3284 = vmatprep.subr.mxu1 %v4099_v41  ;;  %3250 = vmatpush3.msra.mxu0 %v4106_v42  ;;  %v6064_v41 = vld [vmem:[#allocation41_spill] sm:$0xff]  ;;  %v6065_v42 = vld [vmem:[#allocation42_spill] sm:$0xff] }
  0x67   : > { %3285 = vmatpush3.msra.mxu1 %v4111_v43  ;;  %3251 = vmatprep.subr.mxu0 %v4119_v44  ;;  %v6066_v43 = vld [vmem:[#allocation43_spill] sm:$0xff]  ;;  %v6067_v44 = vld [vmem:[#allocation44_spill] sm:$0xff] }
  0x68   : > { %3286 = vmatprep.subr.mxu1 %v4124_v45  ;;  %3252 = vmatpush3.msra.mxu0 %v4131_v46  ;;  %v6068_v45 = vld [vmem:[#allocation45_spill] sm:$0xff]  ;;  %v6069_v46 = vld [vmem:[#allocation46_spill] sm:$0xff] }
  0x69   : > { %3287 = vmatpush3.msra.mxu1 %v4136_v47  ;;  %3253 = vmatprep.subr.mxu0 %v4143_v48  ;;  %v6070_v47 = vld [vmem:[#allocation47_spill] sm:$0xff]  ;;  %v6071_v48 = vld [vmem:[#allocation48_spill] sm:$0xff] }
  0x6a   : > { %3288 = vmatprep.subr.mxu1 %v4148_v49  ;;  %3254 = vmatpush3.msra.mxu0 %v6027_v2  ;;  %v6072_v49 = vld [vmem:[#allocation49_spill] sm:$0xff]  ;;  %v6075_v2 = vld [vmem:[#allocation52_spill] sm:$0xff] }
  0x6b   : > { %3289 = vmatpush3.msra.mxu1 %v6028_v3  ;;  %3255 = vmatprep.subr.mxu0 %v6029_v4  ;;  %v6076_v3 = vld [vmem:[#allocation53_spill] sm:$0xff]  ;;  %v6077_v4 = vld [vmem:[#allocation54_spill] sm:$0xff] }
  0x6c   : > { %3290 = vmatprep.subr.mxu1 %v6030_v5  ;;  %3256 = vmatpush3.msra.mxu0 %v6031_v6  ;;  %v6078_v5 = vld [vmem:[#allocation55_spill] sm:$0xff]  ;;  %v6079_v6 = vld [vmem:[#allocation56_spill] sm:$0xff] }
  0x6d   : > { %3291 = vmatpush3.msra.mxu1 %v6032_v7  ;;  %3257 = vmatprep.subr.mxu0 %v6033_v9  ;;  %v6080_v7 = vld [vmem:[#allocation57_spill] sm:$0xff]  ;;  %v6082_v9 = vld [vmem:[#allocation59_spill] sm:$0xff] }
  0x6e   : > { %3292 = vmatprep.subr.mxu1 %v6034_v10  ;;  %3258 = vmatpush3.msra.mxu0 %v6035_v12  ;;  %v6083_v10 = vld [vmem:[#allocation60_spill] sm:$0xff]  ;;  %v6085_v12 = vld [vmem:[#allocation62_spill] sm:$0xff] }
  0x6f   : > { %3293 = vmatpush3.msra.mxu1 %v6036_v13  ;;  %3259 = vmatprep.subr.mxu0 %v6037_v14  ;;  %v6086_v13 = vld [vmem:[#allocation63_spill] sm:$0xff]  ;;  %v6087_v14 = vld [vmem:[#allocation64_spill] sm:$0xff] }
  0x70   : > { %3294 = vmatprep.subr.mxu1 %v6038_v15  ;;  %3260 = vmatpush3.msra.mxu0 %v6039_v16  ;;  %v6088_v15 = vld [vmem:[#allocation65_spill] sm:$0xff]  ;;  %v789_v16 = vmul.f32 %v4594_v60, %v4594_v60 }
  0x71   : > { %867 = vmatprep.mubr.f32.mxu0 %v795_v8  ;;  %3295 = vmatpush3.msra.mxu1 %v6040_v17  ;;  %v6081_v8 = vld [vmem:[#allocation58_spill] sm:$0xff] }
  0x72   : > { %937 = vmatprep.mubr.f32.mxu1 %v796_v11  ;;  %868 = vmatmul.mubr.f32.vlgmr.msra.gmra.mxu0 %v787_v0  ;;  %v6073_v0 = vld [vmem:[#allocation50_spill] sm:$0xff]  ;;  %v6084_v11 = vld [vmem:[#allocation61_spill] sm:$0xff] }
  0x73   : > { %938 = vmatmul.mubr.f32.vlgmr.msra.gmra.mxu1 %v788_v1  ;;  %3299 = vmatprep.subr.mxu0 %v6041_v18  ;;  %v6074_v1 = vld [vmem:[#allocation51_spill] sm:$0xff]  ;;  %v6089_v17 = vld [vmem:[#allocation66_spill] sm:$0xff] }
  0x74   : > { %3334 = vmatprep.subr.mxu1 %v6042_v19  ;;  %3300 = vmatpush3.msra.mxu0 %v6043_v20  ;;  %v6090_v18 = vld [vmem:[#allocation67_spill] sm:$0xff]  ;;  %v790_v19 = vmul.f32 %v4621_v57, %v4621_v57  ;;  %v6091_v20 = vld [vmem:[#allocation68_spill] sm:$0xff] }
  0x75   : > { %3335 = vmatpush3.msra.mxu1 %v6044_v21  ;;  %3301 = vmatprep.subr.mxu0 %v6045_v22  ;;  %v6092_v21 = vld [vmem:[#allocation69_spill] sm:$0xff]  ;;  %v6093_v22 = vld [vmem:[#allocation70_spill] sm:$0xff] }
  0x76   : > { %3336 = vmatprep.subr.mxu1 %v6046_v23  ;;  %3302 = vmatpush3.msra.mxu0 %v6047_v24  ;;  %v6094_v23 = vld [vmem:[#allocation71_spill] sm:$0xff]  ;;  %v6095_v24 = vld [vmem:[#allocation72_spill] sm:$0xff] }
  0x77   : > { %3337 = vmatpush3.msra.mxu1 %v6048_v25  ;;  %3303 = vmatprep.subr.mxu0 %v6049_v26  ;;  %v6096_v25 = vld [vmem:[#allocation73_spill] sm:$0xff]  ;;  %v797_v26 = vcombine.high %v789_v16, %v789_v16 }
  0x78   : > { %3338 = vmatprep.subr.mxu1 %v6050_v27  ;;  %3304 = vmatpush3.msra.mxu0 %v6051_v28  ;;  %v798_v27 = vcombine.high %v790_v19, %v790_v19  ;;  %v4850_v28 = vld [vmem:[%s5870_s2 + $0x48] sm:$0xff] }
  0x79   : > { %3339 = vmatpush3.msra.mxu1 %v6052_v29  ;;  %3305 = vmatprep.subr.mxu0 %v6053_v30  ;;  %v4857_v29 = vld [vmem:[%s5870_s2 + $0x58] sm:$0xff]  ;;  %v4862_v30 = vld [vmem:[%s5870_s2 + $0x40] sm:$0xff] }
  0x7a   : > { %3340 = vmatprep.subr.mxu1 %v6054_v31  ;;  %3306 = vmatpush3.msra.mxu0 %v6055_v32  ;;  %v4867_v31 = vld [vmem:[%s5870_s2 + $0x50] sm:$0xff]  ;;  %v4874_v32 = vld [vmem:[%s5870_s2 + $0x8] sm:$0xff] }
  0x7b   : > { %3341 = vmatpush3.msra.mxu1 %v6056_v33  ;;  %3307 = vmatprep.subr.mxu0 %v6057_v34  ;;  %v4879_v33 = vld [vmem:[%s5870_s2 + $0x18] sm:$0xff]  ;;  %v4884_v34 = vld [vmem:[%s5870_s2] sm:$0xff] }
  0x7c   : > { %3342 = vmatprep.subr.mxu1 %v6058_v35  ;;  %3308 = vmatpush3.msra.mxu0 %v6059_v36  ;;  %v4891_v35 = vld [vmem:[%s5870_s2 + $0x10] sm:$0xff]  ;;  %v4898_v36 = vld [vmem:[%s5870_s2 + $0xe8] sm:$0xff] }
  0x7d   : > { %3343 = vmatpush3.msra.mxu1 %v6060_v37  ;;  %3309 = vmatprep.subr.mxu0 %v6061_v38  ;;  %v4903_v37 = vld [vmem:[%s5870_s2 + $0xf8] sm:$0xff]  ;;  %v3768_v38 = vmov 0.0  }
  0x7e   : > { %3344 = vmatprep.subr.mxu1 %v6062_v39  ;;  %3310 = vmatpush3.msra.mxu0 %v6063_v40 }
  0x7f   : > { %3345 = vmatpush3.msra.mxu1 %v6064_v41  ;;  %3311 = vmatprep.subr.mxu0 %v6065_v42 }
  0x80   : > { %3346 = vmatprep.subr.mxu1 %v6066_v43  ;;  %3312 = vmatpush3.msra.mxu0 %v6067_v44 }
  0x81   : > { %3347 = vmatpush3.msra.mxu1 %v6068_v45  ;;  %3313 = vmatprep.subr.mxu0 %v6069_v46 }
  0x82   : > { %3348 = vmatprep.subr.mxu1 %v6070_v47  ;;  %3314 = vmatpush3.msra.mxu0 %v6071_v48 }
  0x83   : > { %3349 = vmatpush3.msra.mxu1 %v6072_v49  ;;  %3315 = vmatprep.subr.mxu0 %v6073_v0 }
  0x84   : > { %3350 = vmatprep.subr.mxu1 %v6074_v1  ;;  %3316 = vmatpush3.msra.mxu0 %v6075_v2 }
  0x85   : > { %3351 = vmatpush3.msra.mxu1 %v6076_v3  ;;  %3317 = vmatprep.subr.mxu0 %v6077_v4 }
  0x86   : > { %3352 = vmatprep.subr.mxu1 %v6078_v5  ;;  %3318 = vmatpush3.msra.mxu0 %v6079_v6  ;;  %v4916_v5 = vld [vmem:[%s5870_s2 + $0xe0] sm:$0xff]  ;;  %v4921_v6 = vld [vmem:[%s5870_s2 + $0xf0] sm:$0xff] }
  0x87   : > { %3353 = vmatpush3.msra.mxu1 %v6080_v7  ;;  %3319 = vmatprep.subr.mxu0 %v6081_v8  ;;  %v4926_v7 = vld [vmem:[%s5870_s2 + $0xa8] sm:$0xff]  ;;  %v4931_v8 = vld [vmem:[%s5870_s2 + $0xb8] sm:$0xff] }
  0x88   : > { %3354 = vmatprep.subr.mxu1 %v6082_v9  ;;  %3320 = vmatpush3.msra.mxu0 %v6083_v10  ;;  %v4940_v9 = vld [vmem:[%s5870_s2 + $0xa0] sm:$0xff]  ;;  %v4945_v10 = vld [vmem:[%s5870_s2 + $0xb0] sm:$0xff] }
  0x89   : > { %3355 = vmatpush3.msra.mxu1 %v6084_v11  ;;  %3321 = vmatprep.subr.mxu0 %v6085_v12  ;;  %v4952_v11 = vld [vmem:[%s5870_s2 + $0x68] sm:$0xff]  ;;  %v4957_v12 = vld [vmem:[%s5870_s2 + $0x78] sm:$0xff] }
  0x8a   : > { %3356 = vmatprep.subr.mxu1 %v6086_v13  ;;  %3322 = vmatpush3.msra.mxu0 %v6087_v14  ;;  %v4964_v13 = vld [vmem:[%s5870_s2 + $0x60] sm:$0xff]  ;;  %v4969_v14 = vld [vmem:[%s5870_s2 + $0x70] sm:$0xff] }
  0x8b   : > { %3357 = vmatpush3.msra.mxu1 %v6088_v15  ;;  %3323 = vmatprep.subr.mxu0 %v6089_v17  ;;  %v4976_v15 = vld [vmem:[%s5870_s2 + $0x28] sm:$0xff]  ;;  %v4988_v17 = vld [vmem:[%s5870_s2 + $0x20] sm:$0xff] }
  0x8c   : > { %3358 = vmatprep.subr.mxu1 %v6090_v18  ;;  %3324 = vmatpush3.msra.mxu0 %v6091_v20  ;;  %v4995_v18 = vld [vmem:[%s5870_s2 + $0x30] sm:$0xff] }
  0x8d   : > { %3359 = vmatpush3.msra.mxu1 %v6092_v21  ;;  %3325 = vmatprep.subr.mxu0 %v6093_v22 }
  0x8e   : > { %3360 = vmatprep.subr.mxu1 %v6094_v23  ;;  %3326 = vmatpush3.msra.mxu0 %v6095_v24 }
  0x8f   : > { %3361 = vmatpush3.msra.mxu1 %v6096_v25  ;;  %3327 = vmatprep.subr.mxu0 %v4601_v61  ;;  %v4833_v61 = vld [vmem:[%s5870_s2 + $0x98] sm:$0xff] }
  0x90   : > { %3362 = vmatprep.subr.mxu1 %v4606_v58  ;;  %3328 = vmatpush3.msra.mxu0 %v4613_v55  ;;  %v4804_v58 = vld [vmem:[%s5870_s2 + $0xc8] sm:$0xff] }
  0x91   : > { %3363 = vmatpush3.msra.mxu1 %v4618_v53  ;;  %3329 = vmatprep.subr.mxu0 %v4628_v54  ;;  %v4809_v53 = vld [vmem:[%s5870_s2 + $0xd8] sm:$0xff]  ;;  %v4821_v54 = vld [vmem:[%s5870_s2 + $0xd0] sm:$0xff]  ;;  %v4828_v55 = vld [vmem:[%s5870_s2 + $0x88] sm:$0xff] }
  0x92   : > { %3364 = vmatprep.subr.mxu1 %v4633_v52  ;;  %3330 = vmatpush3.msra.mxu0 %v4644_v62  ;;  %v4816_v52 = vld [vmem:[%s5870_s2 + $0xc0] sm:$0xff] }
  0x93   : > { %1007 = vmatprep.mubr.f32.mxu0 %v797_v26  ;;  %3365 = vmatpush3.msra.mxu1 %v4651_v63  ;;  %v4840_v62 = vld [vmem:[%s5870_s2 + $0x80] sm:$0xff]  ;;  %v4845_v63 = vld [vmem:[%s5870_s2 + $0x90] sm:$0xff] }
  0x94   : > { %1077 = vmatprep.mubr.f32.mxu1 %v798_v27  ;;  %1008 = vmatmul.mubr.f32.vlgmr.msra.gmra.mxu0 %v789_v16  ;;  %v4981_v16 = vld [vmem:[%s5870_s2 + $0x38] sm:$0xff] }
  0x95   : > { %1078 = vmatmul.mubr.f32.vlgmr.msra.gmra.mxu1 %v790_v19  ;;  %1148 = vmatprep.subr.mxu0 %v4804_v58 }
  0x96   : > { %1219 = vmatprep.subr.mxu1 %v4809_v53  ;;  %1149 = vmatpush1.msra.mxu0 %v4816_v52 }
  0x97   : > { %1220 = vmatpush1.msra.mxu1 %v4821_v54  ;;  %1150 = vmatprep.subr.mxu0 %v4828_v55 }
  0x98   : > { %1221 = vmatprep.subr.mxu1 %v4833_v61  ;;  %1151 = vmatpush1.msra.mxu0 %v4840_v62 }
  0x99   : > { %1222 = vmatpush1.msra.mxu1 %v4845_v63  ;;  %1152 = vmatprep.subr.mxu0 %v4850_v28 }
  0x9a   : > { %1223 = vmatprep.subr.mxu1 %v4857_v29  ;;  %1153 = vmatpush1.msra.mxu0 %v4862_v30 }
  0x9b   : > { %1224 = vmatpush1.msra.mxu1 %v4867_v31  ;;  %1154 = vmatprep.subr.mxu0 %v4874_v32 }
  0x9c   : > { %1225 = vmatprep.subr.mxu1 %v4879_v33  ;;  %1155 = vmatpush1.msra.mxu0 %v4884_v34 }
  0x9d   : > { %1226 = vmatpush1.msra.mxu1 %v4891_v35  ;;  %1188 = vmatprep.mubr.f32.mxu0 %v3768_v38 }
  0x9e   : > { %1259 = vmatprep.mubr.f32.mxu1 %v3768_v38  ;;  %1290 = vmatprep.subr.mxu0 %v4898_v36 }
  0x9f   : > { %1361 = vmatprep.subr.mxu1 %v4903_v37 }
  0xee   : > { %v3121_v39 = vpop.f32.mrf.mxu0 }
  0xef   : > { %v3156_v40 = vpop.f32.mrf.mxu1 }
  0xf0   : > { %v3122_v41 = vpop.f32.mrf.mxu0 }
  0xf1   : > { %v3157_v42 = vpop.f32.mrf.mxu1  ;;  %v3123_v43 = vadd.f32 %v3122_v41, %v3121_v39 }
  0xf2   : > { %v3158_v44 = vadd.f32 %v3157_v42, %v3156_v40 }
  0xf4   : > { %v643_v48 = vadd.f32 %v3158_v44, %v3123_v43 }
 0x110   : > { %v3191_v45 = vpop.f32.mrf.mxu0 }
 0x112   : > { %v3226_v46 = vpop.f32.mrf.mxu1  ;;  %v3192_v47 = vpop.f32.mrf.mxu0 }
 0x113   : > { %v3193_v49 = vadd.f32 %v3192_v47, %v3191_v45  ;;  %v365_v47 = vld [vmem:[%s5873_s5] sm:$0xff] }
 0x114   : > { %v3227_v0 = vpop.f32.mrf.mxu1 }
 0x115   : > { %v713_v1 = vadd.f32 %v3193_v49, %v643_v48  ;;  %v3228_v2 = vadd.f32 %v3227_v0, %v3226_v46 }
 0x117   : > { %v783_v3 = vadd.f32 %v3228_v2, %v713_v1 }
 0x119   : > { %v4911_v4 = vmul.f32 0.03125, %v783_v3 }
 0x11b   : > { %3037 = vmatmul.mubr.msk.f32.vlgmr.msra.gmra.mxu0 %vm1120_vm0, %v4911_v4  ;;  %3038 = vmatmul.mubr.msk.f32.vlgmr.msra.gmra.mxu1 %vm1120_vm0, %v4911_v4 }
 0x11c   : > { %1291 = vmatpush1.msra.mxu0 %v4916_v5  ;;  %1362 = vmatpush1.msra.mxu1 %v4921_v6 }
 0x11d   : > { %1292 = vmatprep.subr.mxu0 %v4926_v7  ;;  %1363 = vmatprep.subr.mxu1 %v4931_v8 }
 0x11e   : > { %1293 = vmatpush1.msra.mxu0 %v4940_v9  ;;  %1364 = vmatpush1.msra.mxu1 %v4945_v10 }
 0x11f   : > { %1294 = vmatprep.subr.mxu0 %v4952_v11  ;;  %1365 = vmatprep.subr.mxu1 %v4957_v12 }
 0x120   : > { %1295 = vmatpush1.msra.mxu0 %v4964_v13  ;;  %1366 = vmatpush1.msra.mxu1 %v4969_v14 }
 0x121   : > { %1296 = vmatprep.subr.mxu0 %v4976_v15  ;;  %1367 = vmatprep.subr.mxu1 %v4981_v16 }
 0x122   : > { %1297 = vmatpush1.msra.mxu0 %v4988_v17  ;;  %1330 = vmatprep.mubr.f32.mxu0 %v3768_v38 }
 0x123   : > { %1368 = vmatpush1.msra.mxu1 %v4995_v18  ;;  %1401 = vmatprep.mubr.f32.mxu1 %v3768_v38 }
 0x124   : > { %3039 = vmatmul.mubr.msk.f32.vlgmr.msra.gmra.mxu0 %vm1120_vm0, %v4911_v4  ;;  %3040 = vmatmul.mubr.msk.f32.vlgmr.msra.gmra.mxu1 %vm1120_vm0, %v4911_v4 }
 0x125   : > { %1435 = vmatprep.subr.mxu0 %v4804_v58  ;;  %1506 = vmatprep.subr.mxu1 %v4809_v53 }
 0x126   : > { %1436 = vmatpush1.msra.mxu0 %v4816_v52  ;;  %1507 = vmatpush1.msra.mxu1 %v4821_v54 }
 0x127   : > { %1437 = vmatprep.subr.mxu0 %v4828_v55  ;;  %1508 = vmatprep.subr.mxu1 %v4833_v61 }
 0x128   : > { %1438 = vmatpush1.msra.mxu0 %v4840_v62  ;;  %1509 = vmatpush1.msra.mxu1 %v4845_v63  ;;  %v1084_v63 = vmul.f32 %v4911_v4, %v4911_v4 }
 0x129   : > { %1439 = vmatprep.subr.mxu0 %v4850_v28  ;;  %1510 = vmatprep.subr.mxu1 %v4857_v29 }
 0x12a   : > { %1440 = vmatpush1.msra.mxu0 %v4862_v30  ;;  %1511 = vmatpush1.msra.mxu1 %v4867_v31 }
 0x12b   : > { %1441 = vmatprep.subr.mxu0 %v4874_v32  ;;  %1512 = vmatprep.subr.mxu1 %v4879_v33  ;;  %v1752_v33 = vlaneseq }
 0x12c   : > { %1442 = vmatpush1.msra.mxu0 %v4884_v34  ;;  %1513 = vmatpush1.msra.mxu1 %v4891_v35 }
 0x12d   : > { %1475 = vmatprep.mubr.f32.mxu0 %v3768_v38  ;;  %1546 = vmatprep.mubr.f32.mxu1 %v3768_v38  ;;  %v1753_v39 = vshrl.u32 %v1752_v33, 7  ;;  %v1738_v33 = vld [vmem:[%s5871_s3 + $0x18] sm:$0xff] }
 0x12e   : > { %1577 = vmatprep.subr.mxu0 %v4898_v36  ;;  %1648 = vmatprep.subr.mxu1 %v4903_v37 }
 0x12f   : > { %v1754_v42 = vsub.s32 0, %v1753_v39  ;;  %v1758_v43 = vsub.s32 1, %v1753_v39  ;;  %v1762_v44 = vsub.s32 2, %v1753_v39  ;;  %v1766_v45 = vsub.s32 3, %v1753_v39 }
 0x131   : > { %v5052_v2 = vrot.slane %v365_v47, %v1754_v42  ;;  %v5054_v3 = vrot.slane %v365_v47, %v1758_v43  ;;  %v5056_v4 = vrot.slane %v365_v47, %v1762_v44 }
 0x132   : > { %v3261_v19 = vpop.f32.mrf.mxu0 }
 0x133   : > { %v3296_v20 = vpop.f32.mrf.mxu1 }
 0x134   : > { %v3262_v21 = vpop.f32.mrf.mxu0 }
 0x135   : > { %v3297_v22 = vpop.f32.mrf.mxu1  ;;  %v3263_v23 = vadd.f32 %v3262_v21, %v3261_v19  ;;  %v1782_v21 = vsub.s32 7, %v1753_v39 }
 0x136   : > { %v3298_v24 = vadd.f32 %v3297_v22, %v3296_v20  ;;  %v1778_v20 = vsub.s32 6, %v1753_v39 }
 0x138   : > { %v940_v53 = vadd.f32 %v3298_v24, %v3263_v23 }
 0x154   : > { %v3331_v25 = vpop.f32.mrf.mxu0 }
 0x155   : > { %v3366_v26 = vpop.f32.mrf.mxu1 }
 0x156   : > { %v3332_v27 = vpop.f32.mrf.mxu0 }
 0x157   : > { %v3367_v58 = vpop.f32.mrf.mxu1  ;;  %v3333_v52 = vadd.f32 %v3332_v27, %v3331_v25 }
 0x158   : > { %v3368_v55 = vadd.f32 %v3367_v58, %v3366_v26 }
 0x159   : > { %v1010_v54 = vadd.f32 %v3333_v52, %v940_v53 }
 0x15b   : > { %v1080_v61 = vadd.f32 %v3368_v55, %v1010_v54 }
 0x15d   : > { %v1083_v62 = vmul.f32 0.03125, %v1080_v61 }
 0x15f   : > { %v1085_v28 = vsub.f32 %v1083_v62, %v1084_v63  ;;  %v5082_v62 = vrot.slane %v365_v47, %v1778_v20  ;;  %v5084_v63 = vrot.slane %v365_v47, %v1782_v21 }
 0x161   : > { %v1086_v29 = vadd.f32 1e-08, %v1085_v28  ;;  %v1787_v43 = vcombine.low %v5082_v62, %v5084_v63 }
 0x163   : > { %3754 = vrsqrt.f32 %v1086_v29 }
 0x170   : > { %v3755_v30 = vpop.eup %3754 }
 0x171   : > { %3041 = vmatmul.mubr.msk.f32.vlgmr.msra.gmra.mxu0 %vm1120_vm0, %v3755_v30  ;;  %3042 = vmatmul.mubr.msk.f32.vlgmr.msra.gmra.mxu1 %vm1120_vm0, %v3755_v30 }
 0x172   : > { %1578 = vmatpush1.msra.mxu0 %v4916_v5  ;;  %1649 = vmatpush1.msra.mxu1 %v4921_v6  ;;  %v5058_v5 = vrot.slane %v365_v47, %v1766_v45 }
 0x173   : > { %1579 = vmatprep.subr.mxu0 %v4926_v7  ;;  %1650 = vmatprep.subr.mxu1 %v4931_v8 }
 0x174   : > { %1580 = vmatpush1.msra.mxu0 %v4940_v9  ;;  %1651 = vmatpush1.msra.mxu1 %v4945_v10  ;;  %v1735_v10 = vld [vmem:[%s5871_s3] sm:$0xff] }
 0x175   : > { %1581 = vmatprep.subr.mxu0 %v4952_v11  ;;  %1652 = vmatprep.subr.mxu1 %v4957_v12  ;;  %v1736_v11 = vld [vmem:[%s5871_s3 + $0x8] sm:$0xff] }
 0x176   : > { %1582 = vmatpush1.msra.mxu0 %v4964_v13  ;;  %1653 = vmatpush1.msra.mxu1 %v4969_v14  ;;  %v1744_v14 = vld [vmem:[%s5872_s4 + $0x8] sm:$0xff] }
 0x177   : > { %1583 = vmatprep.subr.mxu0 %v4976_v15  ;;  %1654 = vmatprep.subr.mxu1 %v4981_v16  ;;  %v1785_v15 = vcombine.low %v5056_v4, %v5058_v5  ;;  %v1770_v16 = vsub.s32 4, %v1753_v39 }
 0x178   : > { %1584 = vmatpush1.msra.mxu0 %v4988_v17  ;;  %1617 = vmatprep.mubr.f32.mxu0 %v3768_v38  ;;  %v1774_v17 = vsub.s32 5, %v1753_v39 }
 0x179   : > { %1655 = vmatpush1.msra.mxu1 %v4995_v18  ;;  %1688 = vmatprep.mubr.f32.mxu1 %v3768_v38  ;;  %v5078_v58 = vrot.slane %v365_v47, %v1770_v16 }
 0x17a   : > { %3043 = vmatmul.mubr.msk.f32.vlgmr.msra.gmra.mxu0 %vm1120_vm0, %v3755_v30  ;;  %3044 = vmatmul.mubr.msk.f32.vlgmr.msra.gmra.mxu1 %vm1120_vm0, %v3755_v30  ;;  %v5080_v53 = vrot.slane %v365_v47, %v1774_v17  ;;  %vm3060_vm0 = vmpackc.low %vm3779_vm12, %vm3059_vm15 }
 0x17c   : > { %v1786_v42 = vcombine.low %v5078_v58, %v5080_v53 }
 0x1db   : > { %v1190_v31 = vpop.f32.mrf.mxu0  ;;  %v1261_v32 = vpop.f32.mrf.mxu1 }
 0x1dd   : > { %v1192_v34 = vpop.f32.mrf.mxu0  ;;  %v1263_v35 = vpop.f32.mrf.mxu1 }
 0x1de   : > { %v1703_v46 = vcombine.low %v1190_v31, %v1192_v34  ;;  %v1704_v38 = vcombine.low %v1261_v32, %v1263_v35  ;;  %v1737_v32 = vld [vmem:[%s5871_s3 + $0x10] sm:$0xff] }
 0x1e0   : > { %v1711_v6 = vsub.f32 %v4192_v56, %v1703_v46  ;;  %v1712_v7 = vsub.f32 %v4207_v59, %v1704_v38  ;;  %v1743_v56 = vld [vmem:[%s5872_s4] sm:$0xff]  ;;  %v1784_v59 = vcombine.low %v5052_v2, %v5054_v3 }
 0x1e4   : > { %v1332_v36 = vpop.f32.mrf.mxu0  ;;  %v1403_v37 = vpop.f32.mrf.mxu1 }
 0x1e6   : > { %v1334_v40 = vpop.f32.mrf.mxu0  ;;  %v1405_v41 = vpop.f32.mrf.mxu1 }
 0x1e7   : > { %v1705_v22 = vcombine.low %v1332_v36, %v1334_v40  ;;  %v1706_v23 = vcombine.low %v1403_v37, %v1405_v41  ;;  %v1746_v37 = vld [vmem:[%s5872_s4 + $0x18] sm:$0xff] }
 0x1e9   : > { %v1713_v28 = vsub.f32 %v4594_v60, %v1705_v22  ;;  %v1714_v29 = vsub.f32 %v4621_v57, %v1706_v23  ;;  %v1745_v57 = vld [vmem:[%s5872_s4 + $0x10] sm:$0xff] }
 0x231   : > { %v1477_v48 = vpop.f32.mrf.mxu0  ;;  %v1548_v49 = vpop.f32.mrf.mxu1 }
 0x233   : > { %v1479_v0 = vpop.f32.mrf.mxu0  ;;  %v1550_v1 = vpop.f32.mrf.mxu1 }
 0x234   : > { %v1723_v8 = vcombine.low %v1477_v48, %v1479_v0  ;;  %v1724_v9 = vcombine.low %v1548_v49, %v1550_v1 }
 0x236   : > { %v1731_v12 = vmul.f32 %v1723_v8, %v1711_v6  ;;  %v1732_v13 = vmul.f32 %v1724_v9, %v1712_v7 }
 0x238   : > { %v1739_v18 = vmul.f32 %v1735_v10, %v1731_v12  ;;  %v1740_v19 = vmul.f32 %v1736_v11, %v1732_v13 }
 0x23a   : > { %v1748_v24 = vadd.f32 %v1744_v14, %v1740_v19  ;;  %v1619_v25 = vpop.f32.mrf.mxu0  ;;  %v1690_v26 = vpop.f32.mrf.mxu1  ;;  %v1747_v27 = vadd.f32 %v1743_v56, %v1739_v18 }
 0x23c   : > { %v1621_v52 = vpop.f32.mrf.mxu0  ;;  %v1692_v54 = vpop.f32.mrf.mxu1  ;;  %v1792_v55 = vmul.f32 %v1784_v59, %v1747_v27  ;;  %v1793_v61 = vmul.f32 %v1785_v15, %v1748_v24 }
 0x23d   : > { %v1725_v30 = vcombine.low %v1619_v25, %v1621_v52  ;;  %v1726_v31 = vcombine.low %v1690_v26, %v1692_v54 }
 0x23e   : > { %v1800_v34 = vcombine.high %v1792_v55, %v1792_v55  ;;  %v1801_v39 = vcombine.high %v1793_v61, %v1793_v61 }
 0x23f   : > { %v1733_v35 = vmul.f32 %v1725_v30, %v1713_v28  ;;  %v1734_v36 = vmul.f32 %v1726_v31, %v1714_v29  ;;  %v3778_v29 = vmov 0  }
 0x240   : > { %v3389_v60 = vpack.i.bf16 %v1800_v34, %v1792_v55  ;;  %v3394_v46 = vpack.i.bf16 %v1801_v39, %v1793_v61  ;;  %2262 = vmatprep.mubr.bf16.mxu0 %v3778_v29  ;;  %2303 = vmatprep.mubr.bf16.mxu1 %v3778_v29 }
 0x241   : > { %v1741_v40 = vmul.f32 %v1737_v32, %v1733_v35  ;;  %v1742_v41 = vmul.f32 %v1738_v33, %v1734_v36  ;;  %3569 = vset.pattern.permute.xlu0 %v3778_v29 }
 0x242   : > { %3390 = vrot.lane.b32.xlu0 %v3389_v60, %s3769_s30 }
 0x243   : > { %v1750_v44 = vadd.f32 %v1746_v37, %v1742_v41  ;;  %v1749_v45 = vadd.f32 %v1745_v57, %v1741_v40 }
 0x245   : > { %v1794_v38 = vmul.f32 %v1786_v42, %v1749_v45  ;;  %v1795_v47 = vmul.f32 %v1787_v43, %v1750_v44  ;;  %v2196_v42 = vld [vmem:[%s5875_s7] sm:$0xff] }
 0x246   : > { %3395 = vrot.lane.b32.xlu0 %v3394_v46, %s3769_s30 }
 0x247   : > { %v1802_v48 = vcombine.high %v1794_v38, %v1794_v38  ;;  %v1803_v0 = vcombine.high %v1795_v47, %v1795_v47 }
 0x249   : > { %v3399_v49 = vpack.i.bf16 %v1802_v48, %v1794_v38  ;;  %v3404_v1 = vpack.i.bf16 %v1803_v0, %v1795_v47 }
 0x24b   : > { %3400 = vrot.lane.b32.xlu1 %v3399_v49, %s3769_s30 }
 0x24f   : > { %3405 = vrot.lane.b32.xlu1 %v3404_v1, %s3769_s30 }
 0x2b4   : > { %v3391_v6 = vpop.permute.xlu0 %3390 }
 0x2b5   : > { %v3393_v7 = vunpack.i.h.bf16 %v3391_v6  ;;  %v3392_v8 = vunpack.i.l.bf16 %v3391_v6 }
 0x2b7   : > { %v5109_v9 = vsel %vm1820_vm1, %v3392_v8, %v3393_v7  ;;  %v5112_v10 = vsel %vm1820_vm1, 0.0, %v3392_v8 }
 0x2b8   : > { %v3396_v11 = vpop.permute.xlu0 %3395  ;;  %v3409_v12 = vpack.i.bf16 %v5109_v9, %v5112_v10  ;;  %v1842_v18 = vrot.slane %v5109_v9, 4  ;;  %v1841_v22 = vrot.slane %v5112_v10, 4 }
 0x2b9   : > { %v3398_v13 = vunpack.i.h.bf16 %v3396_v11  ;;  %v3397_v14 = vunpack.i.l.bf16 %v3396_v11 }
 0x2ba   : > { %3410 = vrot.lane.b32.xlu0 %v3409_v12, %s3770_s11 }
 0x2bb   : > { %v5118_v56 = vsel %vm1820_vm1, %v3393_v7, %v3397_v14  ;;  %v5121_v59 = vsel %vm1820_vm1, %v3397_v14, %v3398_v13 }
 0x2bc   : > { %v3419_v15 = vpack.i.bf16 %v5118_v56, %v5109_v9  ;;  %v3414_v16 = vpack.i.bf16 %v5121_v59, %v5118_v56  ;;  %v1843_v17 = vrot.slane %v5118_v56, 4  ;;  %v3429_v19 = vpack.i.bf16 %v5121_v59, %v5112_v10 }
 0x2bd   : > { %v1844_v21 = vrot.slane %v5121_v59, 4  ;;  %v3401_v23 = vpop.permute.xlu1 %3400 }
 0x2be   : > { %3420 = vrot.lane.b32.xlu0 %v3419_v15, %s3771_s15  ;;  %3415 = vrot.lane.b32.xlu1 %v3414_v16, %s3770_s11  ;;  %v3449_v20 = vpack.i.bf16 %v1843_v17, %v1842_v18  ;;  %v3403_v25 = vunpack.i.h.bf16 %v3401_v23  ;;  %v3402_v26 = vunpack.i.l.bf16 %v3401_v23 }
 0x2bf   : > { %v3459_v24 = vpack.i.bf16 %v1844_v21, %v1841_v22 }
 0x2c0   : > { %v5146_v52 = vsel %vm1820_vm1, %v3398_v13, %v3402_v26  ;;  %v5149_v54 = vsel %vm1820_vm1, %v3402_v26, %v3403_v25 }
 0x2c1   : > { %v3406_v27 = vpop.permute.xlu1 %3405  ;;  %v3489_v28 = vpack.i.bf16 %v5149_v54, %v5146_v52  ;;  %v1845_v33 = vrot.slane %v5146_v52, 4  ;;  %v1846_v34 = vrot.slane %v5149_v54, 4 }
 0x2c2   : > { %3425 = vrot.lane.b32.xlu0 %v3419_v15, %s3772_s16  ;;  %3440 = vrot.lane.b32.xlu1 %v3419_v15, %s3773_s12  ;;  %v3408_v55 = vunpack.i.h.bf16 %v3406_v27  ;;  %v3407_v61 = vunpack.i.l.bf16 %v3406_v27 }
 0x2c3   : > { %v3519_v35 = vpack.i.bf16 %v1846_v34, %v1845_v33 }
 0x2c4   : > { %v5158_v30 = vsel %vm1820_vm1, %v3403_v25, %v3407_v61  ;;  %v5161_v31 = vsel %vm1820_vm1, %v3407_v61, %v3408_v55  ;;  %v1838_v39 = vsel %vm1820_vm1, %v3408_v55, 0.0 }
 0x2c5   : > { %v3494_v32 = vpack.i.bf16 %v5161_v31, %v5158_v30  ;;  %v1847_v36 = vrot.slane %v5158_v30, 4  ;;  %v1848_v37 = vrot.slane %v5161_v31, 4  ;;  %v1849_v57 = vrot.slane %v1838_v39, 4 }
 0x2c6   : > { %3430 = vrot.lane.b32.xlu0 %v3429_v19, %s3771_s15  ;;  %3450 = vrot.lane.b32.xlu1 %v3449_v20, %s3774_s18  ;;  %v3544_v41 = vpack.i.bf16 %v1838_v39, %v5161_v31 }
 0x2c7   : > { %v3529_v60 = vpack.i.bf16 %v1848_v37, %v1847_v36  ;;  %v3549_v40 = vpack.i.bf16 %v1849_v57, %v1848_v37 }
 0x2ca   : > { %3435 = vrot.lane.b32.xlu0 %v3429_v19, %s3772_s16  ;;  %3455 = vrot.lane.b32.xlu1 %v3449_v20, %s3775_s19 }
 0x2ce   : > { %3445 = vrot.lane.b32.xlu0 %v3429_v19, %s3773_s12  ;;  %3460 = vrot.lane.b32.xlu1 %v3459_v24, %s3774_s18 }
 0x2d2   : > { %3470 = vrot.lane.b32.xlu0 %v3449_v20, %s3776_s20  ;;  %3465 = vrot.lane.b32.xlu1 %v3459_v24, %s3775_s19 }
 0x2d6   : > { %3475 = vrot.lane.b32.xlu0 %v3449_v20, %s3777_s17  ;;  %3480 = vrot.lane.b32.xlu1 %v3459_v24, %s3776_s20 }
 0x2da   : > { %3485 = vrot.lane.b32.xlu1 %v3459_v24, %s3777_s17  ;;  %3490 = vrot.lane.b32.xlu0 %v3489_v28, %s3770_s11 }
 0x2de   : > { %3495 = vrot.lane.b32.xlu1 %v3494_v32, %s3770_s11  ;;  %3500 = vrot.lane.b32.xlu0 %v3489_v28, %s3771_s15 }
 0x2e2   : > { %3515 = vrot.lane.b32.xlu1 %v3489_v28, %s3773_s12  ;;  %3505 = vrot.lane.b32.xlu0 %v3489_v28, %s3772_s16 }
 0x2e6   : > { %3510 = vrot.lane.b32.xlu0 %v3494_v32, %s3771_s15  ;;  %3520 = vrot.lane.b32.xlu1 %v3519_v35, %s3774_s18 }
 0x2ea   : > { %2037 = vrot.lane.b32.xlu0 %v5158_v30, %s3772_s16  ;;  %3525 = vrot.lane.b32.xlu1 %v3519_v35, %s3775_s19 }
 0x2ee   : > { %3535 = vrot.lane.b32.xlu0 %v3519_v35, %s3776_s20  ;;  %3530 = vrot.lane.b32.xlu1 %v3529_v60, %s3774_s18 }
 0x2f2   : > { %3540 = vrot.lane.b32.xlu0 %v3519_v35, %s3777_s17  ;;  %2072 = vrot.lane.b32.xlu1 %v1847_v36, %s3775_s19 }
 0x2f6   : > { %1897 = vrot.lane.b32.xlu0 %v5158_v30, %s3773_s12  ;;  %1862 = vrot.lane.b32.xlu1 %v1847_v36, %s3776_s20 }
 0x2fa   : > { %2111 = vrot.lane.b32.xlu0 %v1838_v39, %s3770_s11  ;;  %1932 = vrot.lane.b32.xlu1 %v1847_v36, %s3777_s17 }
 0x2fe   : > { %2006 = vrot.lane.b32.xlu0 %v1849_v57, %s3774_s18  ;;  %1971 = vrot.lane.b32.xlu1 %v1838_v39, %s3771_s15 }
 0x302   : > { %3550 = vrot.lane.b32.xlu0 %v3549_v40, %s3775_s19  ;;  %3545 = vrot.lane.b32.xlu1 %v3544_v41, %s3772_s16 }
 0x306   : > { %3555 = vrot.lane.b32.xlu0 %v3544_v41, %s3773_s12  ;;  %3560 = vrot.lane.b32.xlu1 %v3549_v40, %s3776_s20 }
 0x30a   : > { %3565 = vrot.lane.b32.xlu1 %v3549_v40, %s3777_s17  ;;  %2199 = vperm.xlu0 %3569, %v2196_v42  }
 0x32c   : > { %v3411_v43 = vpop.permute.xlu0 %3410 }
 0x32d   : > { %v3413_v44 = vunpack.i.h.bf16 %v3411_v43  ;;  %v3412_v45 = vunpack.i.l.bf16 %v3411_v43 }
 0x32f   : > { %v2114_v46 = vsel %vm2113_vm2, %v3412_v45, %v3413_v44 }
 0x330   : > { %v5203_v38 = vpop.permute.xlu0 %3420  ;;  %v5205_v47 = vpop.permute.xlu1 %3415  ;;  %v2163_v49 = vsel %vm2130_vm3, %v2114_v46, 0.0 }
 0x331   : > { %v3417_v48 = vunpack.i.l.bf16 %v5205_v47  ;;  %v2187_v8 = vpack.c.bf16 %v2163_v49, %v2163_v49  ;;  %v3423_v19 = vunpack.i.h.bf16 %v5203_v38  ;;  %v3422_v20 = vunpack.i.l.bf16 %v5203_v38 }
 0x332   : > { %v3418_v57 = vunpack.i.h.bf16 %v5205_v47 }
 0x333   : > { %v2115_v0 = vsel %vm2113_vm2, %v3413_v44, %v3417_v48  ;;  %v2207_v14 = vsel %vm2130_vm3, %v2187_v8, 0  ;;  %v1975_v55 = vsel %vm1973_vm7, %v3422_v20, %v3423_v19 }
 0x334   : > { %v2164_v1 = vsel %vm2130_vm3, %v2115_v0, 0.0  ;;  %v5211_v6 = vpop.permute.xlu0 %3425  ;;  %v5213_v7 = vpop.permute.xlu1 %3440 }
 0x335   : > { %v2188_v11 = vpack.c.bf16 %v2164_v1, %v2164_v1  ;;  %v3428_v17 = vunpack.i.h.bf16 %v5211_v6  ;;  %v3427_v18 = vunpack.i.l.bf16 %v5211_v6  ;;  %v3443_v44 = vunpack.i.h.bf16 %v5213_v7 }
 0x336   : > { %v3442_v45 = vunpack.i.l.bf16 %v5213_v7 }
 0x337   : > { %3045 = vmatprep.subr.msk.bf16.mxu0 %vm2130_vm3, %v2188_v11  ;;  %v2045_v26 = vsel %vm2043_vm5, %v3427_v18, %v3428_v17  ;;  %v2116_v11 = vsel %vm2113_vm2, %v3417_v48, %v3418_v57 }
 0x338   : > { %v5216_v12 = vpop.permute.xlu0 %3430  ;;  %v5218_v13 = vpop.permute.xlu1 %3450  ;;  %2241 = vmatpush1.bf16.msra.mxu0 %v2207_v14 }
 0x339   : > { %v3453_v15 = vunpack.i.h.bf16 %v5218_v13  ;;  %v3452_v16 = vunpack.i.l.bf16 %v5218_v13  ;;  %v3432_v37 = vunpack.i.l.bf16 %v5216_v12 }
 0x33b   : > { %v2010_v25 = vsel %vm2008_vm4, %v3452_v16, %v3453_v15  ;;  %v1974_v47 = vsel %vm1973_vm7, %v3432_v37, %v3422_v20 }
 0x33c   : > { %v5227_v21 = vpop.permute.xlu0 %3435  ;;  %v5229_v22 = vpop.permute.xlu1 %3455  ;;  %v2148_v33 = vsel %vm2130_vm3, %v1975_v55, %v2010_v25 }
 0x33d   : > { %v3458_v23 = vunpack.i.h.bf16 %v5229_v22  ;;  %v3457_v24 = vunpack.i.l.bf16 %v5229_v22  ;;  %v3437_v36 = vunpack.i.l.bf16 %v5227_v21 }
 0x33f   : > { %v2080_v27 = vsel %vm2078_vm6, %v3457_v24, %v3458_v23  ;;  %v2044_v46 = vsel %vm2043_vm5, %v3437_v36, %v3427_v18 }
 0x340   : > { %v5245_v61 = vpop.permute.xlu0 %3445  ;;  %v5247_v28 = vpop.permute.xlu1 %3460  ;;  %v2156_v32 = vsel %vm2130_vm3, %v2045_v26, %v2080_v27  ;;  %v1905_v26 = vsel %vm1903_vm9, %v3442_v45, %v3443_v44 }
 0x341   : > { %v3462_v34 = vunpack.i.l.bf16 %v5247_v28  ;;  %v2180_v35 = vpack.c.bf16 %v2156_v32, %v2148_v33  ;;  %v3447_v27 = vunpack.i.l.bf16 %v5245_v61 }
 0x343   : > { %2242 = vmatprep.subr.bf16.mxu0 %v2180_v35  ;;  %v2009_v41 = vsel %vm2008_vm4, %v3462_v34, %v3452_v16  ;;  %v2165_v34 = vsel %vm2130_vm3, %v2116_v11, 0.0 }
 0x344   : > { %v5254_v60 = vpop.permute.xlu0 %3470  ;;  %v5256_v39 = vpop.permute.xlu1 %3465  ;;  %v2147_v18 = vsel %vm2130_vm3, %v1974_v47, %v2009_v41 }
 0x345   : > { %v3467_v40 = vunpack.i.l.bf16 %v5256_v39  ;;  %v3473_v42 = vunpack.i.h.bf16 %v5254_v60  ;;  %v3472_v43 = vunpack.i.l.bf16 %v5254_v60 }
 0x347   : > { %v2079_v49 = vsel %vm2078_vm6, %v3467_v40, %v3457_v24  ;;  %v1870_v24 = vsel %vm1868_vm8, %v3472_v43, %v3473_v42 }
 0x348   : > { %v5268_v0 = vpop.permute.xlu0 %3475  ;;  %v5270_v1 = vpop.permute.xlu1 %3480  ;;  %v2155_v8 = vsel %vm2130_vm3, %v2044_v46, %v2079_v49  ;;  %v2132_v40 = vsel %vm2130_vm3, %v5109_v9, %v1870_v24  ;;  %v1904_v49 = vsel %vm1903_vm9, %v3447_v27, %v3442_v45  ;;  %v2189_v24 = vpack.c.bf16 %v2165_v34, %v2165_v34 }
 0x349   : > { %v3478_v14 = vunpack.i.h.bf16 %v5268_v0  ;;  %v3477_v16 = vunpack.i.l.bf16 %v5268_v0  ;;  %v3482_v20 = vunpack.i.l.bf16 %v5270_v1  ;;  %v2179_v25 = vpack.c.bf16 %v2155_v8, %v2147_v18 }
 0x34a   : > { %v2213_v34 = vsel %vm2130_vm3, %v2189_v24, 0 }
 0x34b   : > { %v1940_v48 = vsel %vm1938_vm10, %v3477_v16, %v3478_v14  ;;  %2243 = vmatpush1.bf16.msra.mxu0 %v2179_v25  ;;  %v1869_v41 = vsel %vm1868_vm8, %v3482_v20, %v3472_v43 }
 0x34c   : > { %v5288_v55 = vpop.permute.xlu1 %3485  ;;  %v3491_v32 = vpop.permute.xlu0 %3490  ;;  %v2140_v33 = vsel %vm2130_vm3, %v1905_v26, %v1940_v48  ;;  %v2131_v45 = vsel %vm2130_vm3, %v5112_v10, %v1869_v41  ;;  %v5323_v10 = vld [vmem:[%s5874_s6] sm:$0xf]  ;;  %v3433_v41 = vunpack.i.h.bf16 %v5216_v12 }
 0x34d   : > { %v3487_v35 = vunpack.i.l.bf16 %v5288_v55  ;;  %v3493_v36 = vunpack.i.h.bf16 %v3491_v32  ;;  %v3492_v37 = vunpack.i.l.bf16 %v3491_v32  ;;  %v2172_v46 = vpack.c.bf16 %v2140_v33, %v2132_v40 }
 0x34e   : > { %v1976_v24 = vsel %vm1973_vm7, %v3423_v19, %v3433_v41 }
 0x34f   : > { %v1939_v47 = vsel %vm1938_vm10, %v3487_v35, %v3477_v16  ;;  %v2117_v8 = vsel %vm2113_vm2, %v3418_v57, %v3492_v37  ;;  %v2118_v18 = vsel %vm2113_vm2, %v3492_v37, %v3493_v36  ;;  %2244 = vmatprep.subr.bf16.mxu0 %v2172_v46  ;;  %v3468_v37 = vunpack.i.h.bf16 %v5256_v39 }
 0x350   : > { %v2166_v11 = vsel %vm2130_vm3, %v2117_v8, 0.0  ;;  %v5301_v25 = vpop.permute.xlu1 %3495  ;;  %v5303_v26 = vpop.permute.xlu0 %3500  ;;  %v2139_v9 = vsel %vm2130_vm3, %v1904_v49, %v1939_v47  ;;  %v2167_v16 = vsel %vm2130_vm3, %v2118_v18, 0.0  ;;  %v3438_v46 = vunpack.i.h.bf16 %v5227_v21 }
 0x351   : > { %v3497_v43 = vunpack.i.l.bf16 %v5301_v25  ;;  %v2171_v57 = vpack.c.bf16 %v2139_v9, %v2131_v45  ;;  %v2190_v20 = vpack.c.bf16 %v2166_v11, %v2166_v11  ;;  %v2191_v35 = vpack.c.bf16 %v2167_v16, %v2167_v16 }
 0x352   : > { %v3448_v49 = vunpack.i.h.bf16 %v5245_v61  ;;  %v2081_v12 = vsel %vm2078_vm6, %v3458_v23, %v3468_v37  ;;  %v3488_v21 = vunpack.i.h.bf16 %v5288_v55  ;;  %v3502_v11 = vunpack.i.l.bf16 %v5303_v26 }
 0x353   : > { %v2119_v27 = vsel %vm2113_vm2, %v3493_v36, %v3497_v43  ;;  %2245 = vmatpush1.bf16.msra.mxu0 %v2171_v57  ;;  %3047 = vmatprep.subr.msk.bf16.mxu1 %vm2130_vm3, %v2190_v20  ;;  %v3463_v36 = vunpack.i.h.bf16 %v5247_v28  ;;  %v2219_v8 = vsel %vm2130_vm3, %v2191_v35, 0  ;;  %v2046_v13 = vsel %vm2043_vm5, %v3428_v17, %v3438_v46 }
 0x354   : > { %v2168_v48 = vsel %vm2130_vm3, %v2119_v27, 0.0  ;;  %v5315_v32 = vpop.permute.xlu1 %3515  ;;  %v5317_v33 = vpop.permute.xlu0 %3505  ;;  %2282 = vmatpush1.bf16.msra.mxu1 %v2213_v34  ;;  %v3483_v55 = vunpack.i.h.bf16 %v5270_v1  ;;  %v2157_v19 = vsel %vm2130_vm3, %v2046_v13, %v2081_v12  ;;  %v1941_v6 = vsel %vm1938_vm10, %v3478_v14, %v3488_v21 }
 0x355   : > { %v2192_v40 = vpack.c.bf16 %v2168_v48, %v2168_v48  ;;  %v2011_v28 = vsel %vm2008_vm4, %v3453_v15, %v3463_v36  ;;  %v3507_v9 = vunpack.i.l.bf16 %v5317_v33  ;;  %v1906_v15 = vsel %vm1903_vm9, %v3443_v44, %v3448_v49 }
 0x356   : > { %3046 = vmatmul.mubr.msk.bf16.vlgmr.msra.gmra.mxu0 %vm2202_vm11, %v5323_v10  ;;  %v2149_v38 = vsel %vm2130_vm3, %v1976_v24, %v2011_v28  ;;  %v3498_v17 = vunpack.i.h.bf16 %v5301_v25  ;;  %v3503_v44 = vunpack.i.h.bf16 %v5303_v26  ;;  %v1977_v57 = vsel %vm1973_vm7, %v3433_v41, %v3502_v11 }
 0x357   : > { %3049 = vmatprep.subr.msk.bf16.mxu0 %vm2130_vm3, %v2192_v40  ;;  %2344 = vmatprep.mubr.bf16.mxu0 %v3778_v29  ;;  %v2047_v1 = vsel %vm2043_vm5, %v3438_v46, %v3507_v9  ;;  %v3508_v27 = vunpack.i.h.bf16 %v5317_v33  ;;  %v2181_v41 = vpack.c.bf16 %v2157_v19, %v2149_v38  ;;  %v3517_v12 = vunpack.i.l.bf16 %v5315_v32 }
 0x358   : > { %v5333_v47 = vpop.permute.xlu0 %3510  ;;  %v3521_v18 = vpop.permute.xlu1 %3520  ;;  %2323 = vmatpush1.bf16.msra.mxu0 %v2219_v8  ;;  %v2141_v8 = vsel %vm2130_vm3, %v1906_v15, %v1941_v6  ;;  %v1978_v28 = vsel %vm1973_vm7, %v3502_v11, %v3503_v44  ;;  %v3518_v19 = vunpack.i.h.bf16 %v5315_v32 }
 0x359   : > { %v3522_v39 = vunpack.i.l.bf16 %v3521_v18  ;;  %v3512_v48 = vunpack.i.l.bf16 %v5333_v47  ;;  %v3523_v0 = vunpack.i.h.bf16 %v3521_v18  ;;  %v2120_v18 = vsel %vm2113_vm2, %v3497_v43, %v3498_v17 }
 0x35b   : > { %v2012_v7 = vsel %vm2008_vm4, %v3463_v36, %v3522_v39  ;;  %v1979_v24 = vsel %vm1973_vm7, %v3503_v44, %v3512_v48  ;;  %v2013_v13 = vsel %vm2008_vm4, %v3522_v39, %v3523_v0  ;;  %v1907_v44 = vsel %vm1903_vm9, %v3448_v49, %v3517_v12 }
 0x35c   : > { %v5357_v22 = vpop.permute.xlu0 %2037  ;;  %v3526_v23 = vpop.permute.xlu1 %3525  ;;  %v2150_v26 = vsel %vm2130_vm3, %v1977_v57, %v2012_v7 }
 0x35d   : > { %v3527_v45 = vunpack.i.l.bf16 %v3526_v23  ;;  %v3528_v16 = vunpack.i.h.bf16 %v3526_v23  ;;  %v2049_v15 = vsel %vm2043_vm5, %v3508_v27, %v5357_v22 }
 0x35f   : > { %v2082_v20 = vsel %vm2078_vm6, %v3468_v37, %v3527_v45  ;;  %v1871_v37 = vsel %vm1868_vm8, %v3473_v42, %v3483_v55  ;;  %v2083_v33 = vsel %vm2078_vm6, %v3527_v45, %v3528_v16  ;;  %v2048_v42 = vsel %vm2043_vm5, %v3507_v9, %v3508_v27 }
 0x360   : > { %v3536_v34 = vpop.permute.xlu0 %3535  ;;  %v5373_v14 = vpop.permute.xlu1 %3530  ;;  %v2158_v35 = vsel %vm2130_vm3, %v2047_v1, %v2082_v20  ;;  %v2159_v9 = vsel %vm2130_vm3, %v2048_v42, %v2083_v33  ;;  %v2151_v1 = vsel %vm2130_vm3, %v1978_v28, %v2013_v13  ;;  %v2133_v49 = vsel %vm2130_vm3, %v5118_v56, %v1871_v37 }
 0x361   : > { %v3537_v36 = vunpack.i.l.bf16 %v3536_v34  ;;  %v3532_v40 = vunpack.i.l.bf16 %v5373_v14  ;;  %v2182_v46 = vpack.c.bf16 %v2158_v35, %v2150_v26  ;;  %v2183_v32 = vpack.c.bf16 %v2159_v9, %v2151_v1 }
 0x362   : > { %v1908_v33 = vsel %vm1903_vm9, %v3517_v12, %v3518_v19 }
 0x363   : > { %v2014_v60 = vsel %vm2008_vm4, %v3523_v0, %v3532_v40  ;;  %2283 = vmatprep.subr.bf16.mxu1 %v2182_v46  ;;  %v1872_v23 = vsel %vm1868_vm8, %v3483_v55, %v3537_v36 }
 0x364   : > { %v3541_v43 = vpop.permute.xlu0 %3540  ;;  %v5400_v11 = vpop.permute.xlu1 %2072  ;;  %2284 = vmatpush1.bf16.msra.mxu1 %v2181_v41  ;;  %v2152_v7 = vsel %vm2130_vm3, %v1979_v24, %v2014_v60  ;;  %v2134_v0 = vsel %vm2130_vm3, %v5121_v59, %v1872_v23  ;;  %v3533_v23 = vunpack.i.h.bf16 %v5373_v14 }
 0x365   : > { %v3542_v45 = vunpack.i.l.bf16 %v3541_v43  ;;  %v2084_v38 = vsel %vm2078_vm6, %v3528_v16, %v5400_v11  ;;  %v3543_v6 = vunpack.i.h.bf16 %v3541_v43  ;;  %v3538_v16 = vunpack.i.h.bf16 %v3536_v34 }
 0x366   : > { %v2160_v39 = vsel %vm2130_vm3, %v2049_v15, %v2084_v38  ;;  %v2173_v34 = vpack.c.bf16 %v2141_v8, %v2133_v49 }
 0x367   : > { %v1942_v55 = vsel %vm1938_vm10, %v3488_v21, %v3542_v45  ;;  %v2184_v57 = vpack.c.bf16 %v2160_v39, %v2152_v7  ;;  %v2169_v21 = vsel %vm2130_vm3, %v2120_v18, 0.0  ;;  %v1943_v26 = vsel %vm1938_vm10, %v3542_v45, %v3543_v6 }
 0x368   : > { %v5414_v20 = vpop.permute.xlu0 %1897  ;;  %v5416_v27 = vpop.permute.xlu1 %1862  ;;  %v2142_v35 = vsel %vm2130_vm3, %v1907_v44, %v1942_v55  ;;  %v1873_v59 = vsel %vm1868_vm8, %v3537_v36, %v3538_v16  ;;  %v2193_v60 = vpack.c.bf16 %v2169_v21, %v2169_v21  ;;  %v2143_v18 = vsel %vm2130_vm3, %v1908_v33, %v1943_v26 }
 0x369   : > { %2324 = vmatprep.subr.bf16.mxu0 %v2184_v57  ;;  %v2174_v61 = vpack.c.bf16 %v2142_v35, %v2134_v0  ;;  %v1874_v41 = vsel %vm1868_vm8, %v3538_v16, %v5416_v27  ;;  %v1909_v56 = vsel %vm1903_vm9, %v3518_v19, %v5414_v20  ;;  %v2135_v25 = vsel %vm2130_vm3, %v5146_v52, %v1873_v59 }
 0x36a   : > { %2325 = vmatpush1.bf16.msra.mxu0 %v2183_v32  ;;  %v2136_v36 = vsel %vm2130_vm3, %v5149_v54, %v1874_v41  ;;  %v2175_v43 = vpack.c.bf16 %v2143_v18, %v2135_v25  ;;  %v2225_v54 = vsel %vm2130_vm3, %v2193_v60, 0  ;;  %v3513_v45 = vunpack.i.h.bf16 %v5333_v47 }
 0x36b   : > { %2285 = vmatprep.subr.bf16.mxu1 %v2174_v61  ;;  %v2015_v7 = vsel %vm2008_vm4, %v3532_v40, %v3533_v23 }
 0x36c   : > { %v2112_v46 = vpop.permute.xlu0 %2111  ;;  %v5429_v28 = vpop.permute.xlu1 %1932  ;;  %2286 = vmatpush1.bf16.msra.mxu1 %v2173_v34  ;;  %v1980_v14 = vsel %vm1973_vm7, %v3512_v48, %v3513_v45 }
 0x36d   : > { %v2121_v37 = vsel %vm2113_vm2, %v3498_v17, %v2112_v46  ;;  %v1944_v8 = vsel %vm1938_vm10, %v3543_v6, %v5429_v28  ;;  %v2153_v26 = vsel %vm2130_vm3, %v1980_v14, %v2015_v7 }
 0x36e   : > { %v2170_v12 = vsel %vm2130_vm3, %v2121_v37, 0.0  ;;  %v2144_v42 = vsel %vm2130_vm3, %v1909_v56, %v1944_v8 }
 0x36f   : > { %v2194_v24 = vpack.c.bf16 %v2170_v12, %v2170_v12  ;;  %3048 = vmatmul.mubr.msk.bf16.vlgmr.msra.gmra.mxu1 %vm2202_vm11, %v5323_v10  ;;  %v2176_v13 = vpack.c.bf16 %v2144_v42, %v2136_v36 }
 0x370   : > { %v2007_v17 = vpop.permute.xlu0 %2006  ;;  %v1972_v15 = vpop.permute.xlu1 %1971  ;;  %2385 = vmatprep.mubr.bf16.mxu1 %v3778_v29 }
 0x371   : > { %2326 = vmatprep.subr.bf16.mxu0 %v2176_v13  ;;  %3051 = vmatprep.subr.msk.bf16.mxu1 %vm2130_vm3, %v2194_v24  ;;  %v2016_v44 = vsel %vm2008_vm4, %v3533_v23, %v2007_v17  ;;  %v1981_v55 = vsel %vm1973_vm7, %v3513_v45, %v1972_v15 }
 0x372   : > { %2327 = vmatpush1.bf16.msra.mxu0 %v2175_v43  ;;  %2364 = vmatpush1.bf16.msra.mxu1 %v2225_v54  ;;  %v2154_v49 = vsel %vm2130_vm3, %v1981_v55, %v2016_v44 }
 0x374   : > { %v3551_v38 = vpop.permute.xlu0 %3550  ;;  %v3546_v9 = vpop.permute.xlu1 %3545 }
 0x375   : > { %v3553_v19 = vunpack.i.h.bf16 %v3551_v38  ;;  %v3552_v52 = vunpack.i.l.bf16 %v3551_v38  ;;  %v3548_v6 = vunpack.i.h.bf16 %v3546_v9  ;;  %v3547_v39 = vunpack.i.l.bf16 %v3546_v9  ;;  %3050 = vmatmul.mubr.msk.bf16.vlgmr.msra.gmra.mxu0 %vm2202_vm11, %v5323_v10 }
 0x376   : > { %2833 = vmatprep.mubr.bf16.mxu0 %v3778_v29 }
 0x377   : > { %v2085_v57 = vsel %vm2078_vm6, %v5400_v11, %v3552_v52  ;;  %v2086_v1 = vsel %vm2078_vm6, %v3552_v52, %v3553_v19  ;;  %v2050_v16 = vsel %vm2043_vm5, %v5357_v22, %v3547_v39  ;;  %v2051_v32 = vsel %vm2043_vm5, %v3547_v39, %v3548_v6 }
 0x378   : > { %v3556_v40 = vpop.permute.xlu0 %3555  ;;  %v3561_v0 = vpop.permute.xlu1 %3560  ;;  %v2162_v35 = vsel %vm2130_vm3, %v2051_v32, %v2086_v1  ;;  %v2161_v61 = vsel %vm2130_vm3, %v2050_v16, %v2085_v57 }
 0x379   : > { %v3563_v11 = vunpack.i.h.bf16 %v3561_v0  ;;  %v3562_v21 = vunpack.i.l.bf16 %v3561_v0  ;;  %v2186_v34 = vpack.c.bf16 %v2162_v35, %v2154_v49  ;;  %v2185_v22 = vpack.c.bf16 %v2161_v61, %v2153_v26 }
 0x37a   : > { %v3558_v41 = vunpack.i.h.bf16 %v3556_v40  ;;  %v3557_v33 = vunpack.i.l.bf16 %v3556_v40 }
 0x37b   : > { %2365 = vmatprep.subr.bf16.mxu1 %v2186_v34  ;;  %v1875_v48 = vsel %vm1868_vm8, %v5416_v27, %v3562_v21  ;;  %v1876_v59 = vsel %vm1868_vm8, %v3562_v21, %v3563_v11 }
 0x37c   : > { %v3566_v47 = vpop.permute.xlu1 %3565  ;;  %2366 = vmatpush1.bf16.msra.mxu1 %v2185_v22  ;;  %v1910_v56 = vsel %vm1903_vm9, %v5414_v20, %v3557_v33  ;;  %v1911_v37 = vsel %vm1903_vm9, %v3557_v33, %v3558_v41  ;;  %v2138_v36 = vsel %vm2130_vm3, %v5161_v31, %v1876_v59  ;;  %v2137_v12 = vsel %vm2130_vm3, %v5158_v30, %v1875_v48 }
 0x37d   : > { %v3568_v46 = vunpack.i.h.bf16 %v3566_v47  ;;  %v3567_v60 = vunpack.i.l.bf16 %v3566_v47 }
 0x37f   : > { %v1945_v8 = vsel %vm1938_vm10, %v5429_v28, %v3567_v60  ;;  %v1946_v18 = vsel %vm1938_vm10, %v3567_v60, %v3568_v46 }
 0x380   : > { %v2146_v27 = vsel %vm2130_vm3, %v1911_v37, %v1946_v18  ;;  %v2145_v42 = vsel %vm2130_vm3, %v1910_v56, %v1945_v8 }
 0x381   : > { %v2178_v24 = vpack.c.bf16 %v2146_v27, %v2138_v36  ;;  %v2177_v13 = vpack.c.bf16 %v2145_v42, %v2137_v12 }
 0x383   : > { %2367 = vmatprep.subr.bf16.mxu1 %v2178_v24 }
 0x384   : > { %2368 = vmatpush1.bf16.msra.mxu1 %v2177_v13 }
 0x385   : > { %v2200_v20 = vpop.permute.xlu0 %2199 }
 0x387   : > { %3052 = vmatmul.mubr.msk.bf16.vlgmr.msra.gmra.mxu1 %vm2202_vm11, %v5323_v10 }
 0x388   : > { %2874 = vmatprep.mubr.bf16.mxu1 %v3778_v29 }
 0x416   : > { %v2264_v28 = vpop.f32.mrf.mxu0 }
 0x417   : > { %v2265_v25 = vadd.f32 %v2264_v28, %v2200_v20 }
 0x418   : > { %v2266_v31 = vpop.f32.mrf.mxu0 }
 0x419   : > { %v2267_v17 = vadd.f32 %v2266_v31, %v2200_v20  ;;  %v2394_v15 = vmax.f32 %v2265_v25, 0.0 }
 0x41a   : > { %v2268_v43 = vpop.f32.mrf.mxu0 }
 0x41b   : > { %v2395_v54 = vmax.f32 %v2267_v17, 0.0  ;;  %v2402_v30 = vmul.f32 %v2394_v15, %v2394_v15 }
 0x41c   : > { %v2269_v23 = vpop.f32.mrf.mxu0 }
 0x41d   : > { %v2403_v45 = vmul.f32 %v2395_v54, %v2395_v54  ;;  %v2418_v38 = vmul.f32 %v2402_v30, %v5052_v2 }
 0x41f   : > { %v2419_v9 = vmul.f32 %v2403_v45, %v5054_v3 }
 0x421   : > { %v3570_v19 = vpack.i.bf16 %v2419_v9, %v2418_v38 }
 0x423   : > { %3571 = vrot.lane.b32.xlu1 %v3570_v19, %s3769_s30 }
 0x42f   : > { %v2305_v10 = vpop.f32.mrf.mxu1 }
 0x430   : > { %v2306_v52 = vadd.f32 %v2305_v10, %v2200_v20 }
 0x431   : > { %v2307_v6 = vpop.f32.mrf.mxu1 }
 0x432   : > { %v2396_v39 = vmax.f32 %v2306_v52, 0.0  ;;  %v2308_v7 = vadd.f32 %v2307_v6, %v2200_v20 }
 0x433   : > { %v2309_v44 = vpop.f32.mrf.mxu1 }
 0x434   : > { %v2404_v55 = vmul.f32 %v2396_v39, %v2396_v39  ;;  %v2397_v57 = vmax.f32 %v2308_v7, 0.0  ;;  %v2791_v44 = vld [vmem:[%s5877_s9] sm:$0xff] }
 0x435   : > { %v2310_v1 = vpop.f32.mrf.mxu1  ;;  %v2346_v16 = vpop.f32.mrf.mxu0 }
 0x436   : > { %v2405_v32 = vmul.f32 %v2397_v57, %v2397_v57  ;;  %v2347_v14 = vadd.f32 %v2346_v16, %v2200_v20  ;;  %v2420_v2 = vmul.f32 %v2404_v55, %v5056_v4 }
 0x437   : > { %v2348_v40 = vpop.f32.mrf.mxu0 }
 0x438   : > { %v2421_v3 = vmul.f32 %v2405_v32, %v5058_v5  ;;  %v2398_v0 = vmax.f32 %v2347_v14, 0.0  ;;  %v2349_v35 = vadd.f32 %v2348_v40, %v2200_v20 }
 0x439   : > { %v2350_v61 = vpop.f32.mrf.mxu0 }
 0x43a   : > { %v2406_v49 = vmul.f32 %v2398_v0, %v2398_v0  ;;  %v2399_v11 = vmax.f32 %v2349_v35, 0.0  ;;  %v3575_v21 = vpack.i.bf16 %v2421_v3, %v2420_v2  ;;  %v6099_v3 = vld [vmem:[#allocation14_spill] sm:$0xff] }
 0x43b   : > { %v2351_v26 = vpop.f32.mrf.mxu0 }
 0x43c   : > { %v2407_v34 = vmul.f32 %v2399_v11, %v2399_v11  ;;  %3576 = vrot.lane.b32.xlu1 %v3575_v21, %s3769_s30  ;;  %v2422_v22 = vmul.f32 %v2406_v49, %v5078_v58 }
 0x43e   : > { %v2423_v41 = vmul.f32 %v2407_v34, %v5080_v53 }
 0x440   : > { %v3580_v33 = vpack.i.bf16 %v2423_v41, %v2422_v22 }
 0x442   : > { %3581 = vrot.lane.b32.xlu0 %v3580_v33, %s3769_s30 }
 0x447   : > { %v2387_v4 = vpop.f32.mrf.mxu1 }
 0x448   : > { %v2388_v47 = vadd.f32 %v2387_v4, %v2200_v20 }
 0x449   : > { %v2389_v5 = vpop.f32.mrf.mxu1 }
 0x44a   : > { %v2400_v48 = vmax.f32 %v2388_v47, 0.0  ;;  %v2390_v59 = vadd.f32 %v2389_v5, %v2200_v20 }
 0x44b   : > { %v2391_v46 = vpop.f32.mrf.mxu1 }
 0x44c   : > { %v2408_v60 = vmul.f32 %v2400_v48, %v2400_v48  ;;  %v2401_v56 = vmax.f32 %v2390_v59, 0.0 }
 0x44d   : > { %v2392_v37 = vpop.f32.mrf.mxu1 }
 0x44e   : > { %v2409_v8 = vmul.f32 %v2401_v56, %v2401_v56  ;;  %v2424_v18 = vmul.f32 %v2408_v60, %v5082_v62 }
 0x450   : > { %v2425_v36 = vmul.f32 %v2409_v8, %v5084_v63 }
 0x452   : > { %v3585_v58 = vpack.i.bf16 %v2425_v36, %v2424_v18 }
 0x454   : > { %3586 = vrot.lane.b32.xlu1 %v3585_v58, %s3769_s30 }
 0x495   : > { %v3572_v53 = vpop.permute.xlu1 %3571 }
 0x496   : > { %v5503_v27 = vunpack.i.l.bf16 %v3572_v53  ;;  %v3574_v42 = vunpack.i.h.bf16 %v3572_v53 }
 0x498   : > { %v2466_v12 = vsel %vm1820_vm1, 0.0, %v5503_v27  ;;  %v5511_v62 = vsel %vm1820_vm1, %v5503_v27, %v3574_v42 }
 0x499   : > { %2538 = vrot.lane.b32.xlu0 %v2466_v12, %s3777_s17  ;;  %2470 = vrot.lane.b32.xlu1 %v2466_v12, %s3776_s20 }
 0x4ae   : > { %v3577_v24 = vpop.permute.xlu1 %3576 }
 0x4af   : > { %v3578_v13 = vunpack.i.l.bf16 %v3577_v24  ;;  %v3579_v28 = vunpack.i.h.bf16 %v3577_v24 }
 0x4b1   : > { %v5514_v63 = vsel %vm1820_vm1, %v3574_v42, %v3578_v13  ;;  %v5521_v17 = vsel %vm1820_vm1, %v3578_v13, %v3579_v28 }
 0x4b2   : > { %v3595_v20 = vpack.i.bf16 %v5514_v63, %v5511_v62 }
 0x4b4   : > { %v3582_v25 = vpop.permute.xlu0 %3581  ;;  %3596 = vrot.lane.b32.xlu1 %v3595_v20, %s3772_s16  ;;  %3591 = vrot.lane.b32.xlu0 %v3595_v20, %s3770_s11 }
 0x4b5   : > { %v3583_v31 = vunpack.i.l.bf16 %v3582_v25  ;;  %v3584_v54 = vunpack.i.h.bf16 %v3582_v25 }
 0x4b7   : > { %v5524_v15 = vsel %vm1820_vm1, %v3579_v28, %v3583_v31  ;;  %v5541_v30 = vsel %vm1820_vm1, %v3583_v31, %v3584_v54 }
 0x4b8   : > { %3601 = vrot.lane.b32.xlu1 %v3595_v20, %s3775_s19  ;;  %v3635_v43 = vpack.i.bf16 %v5524_v15, %v5521_v17  ;;  %v3675_v23 = vpack.i.bf16 %v5541_v30, %v2466_v12 }
 0x4ba   : > { %3636 = vrot.lane.b32.xlu0 %v3635_v43, %s3772_s16 }
 0x4bc   : > { %3606 = vrot.lane.b32.xlu1 %v3595_v20, %s3771_s15 }
 0x4be   : > { %3641 = vrot.lane.b32.xlu0 %v3635_v43, %s3775_s19 }
 0x4c0   : > { %3611 = vrot.lane.b32.xlu1 %v3595_v20, %s3774_s18 }
 0x4c2   : > { %3646 = vrot.lane.b32.xlu0 %v3635_v43, %s3771_s15 }
 0x4c4   : > { %3616 = vrot.lane.b32.xlu1 %v3595_v20, %s3773_s12 }
 0x4c6   : > { %3651 = vrot.lane.b32.xlu0 %v3635_v43, %s3774_s18  ;;  %v3587_v45 = vpop.permute.xlu1 %3586 }
 0x4c7   : > { %v3588_v38 = vunpack.i.l.bf16 %v3587_v45  ;;  %v3589_v9 = vunpack.i.h.bf16 %v3587_v45  ;;  %v6100_v45 = vld [vmem:[#allocation16_spill] sm:$0xff] }
 0x4c8   : > { %3621 = vrot.lane.b32.xlu1 %v3595_v20, %s3777_s17 }
 0x4c9   : > { %v5552_v19 = vsel %vm1820_vm1, %v3584_v54, %v3588_v38  ;;  %v2467_v10 = vsel %vm1820_vm1, %v3589_v9, 0.0  ;;  %v5560_v6 = vsel %vm1820_vm1, %v3588_v38, %v3589_v9  ;;  %v3756_v9 = vld [vmem:[%s4153_s29 + $0x8] sm:$0xff] }
 0x4ca   : > { %3656 = vrot.lane.b32.xlu0 %v3635_v43, %s3773_s12  ;;  %v3700_v52 = vpack.i.bf16 %v5552_v19, %v5541_v30  ;;  %v3705_v39 = vpack.i.bf16 %v5560_v6, %v5552_v19  ;;  %v3740_v7 = vpack.i.bf16 %v2467_v10, %v5560_v6 }
 0x4cc   : > { %3626 = vrot.lane.b32.xlu1 %v3595_v20, %s3776_s20 }
 0x4ce   : > { %3661 = vrot.lane.b32.xlu0 %v3635_v43, %s3777_s17 }
 0x4d0   : > { %3631 = vrot.lane.b32.xlu1 %v3635_v43, %s3770_s11 }
 0x4d2   : > { %3666 = vrot.lane.b32.xlu0 %v3635_v43, %s3776_s20 }
 0x4d4   : > { %3676 = vrot.lane.b32.xlu1 %v3675_v23, %s3772_s16 }
 0x4d6   : > { %3671 = vrot.lane.b32.xlu0 %v3675_v23, %s3770_s11 }
 0x4d8   : > { %3686 = vrot.lane.b32.xlu1 %v3675_v23, %s3771_s15 }
 0x4da   : > { %3681 = vrot.lane.b32.xlu0 %v3675_v23, %s3775_s19 }
 0x4dc   : > { %3696 = vrot.lane.b32.xlu1 %v3675_v23, %s3773_s12 }
 0x4de   : > { %3691 = vrot.lane.b32.xlu0 %v3675_v23, %s3774_s18 }
 0x4e0   : > { %2724 = vrot.lane.b32.xlu1 %v2467_v10, %s3770_s11 }
 0x4e2   : > { %3701 = vrot.lane.b32.xlu0 %v3700_v52, %s3777_s17 }
 0x4e4   : > { %2656 = vrot.lane.b32.xlu1 %v2467_v10, %s3772_s16 }
 0x4e6   : > { %3706 = vrot.lane.b32.xlu0 %v3705_v39, %s3770_s11 }
 0x4e8   : > { %2690 = vrot.lane.b32.xlu1 %v2467_v10, %s3775_s19 }
 0x4ea   : > { %3711 = vrot.lane.b32.xlu0 %v3705_v39, %s3772_s16 }
 0x4ec   : > { %2588 = vrot.lane.b32.xlu1 %v2467_v10, %s3771_s15 }
 0x4ee   : > { %3716 = vrot.lane.b32.xlu0 %v3705_v39, %s3775_s19 }
 0x4f0   : > { %2622 = vrot.lane.b32.xlu1 %v2467_v10, %s3774_s18 }
 0x4f2   : > { %3721 = vrot.lane.b32.xlu0 %v3705_v39, %s3771_s15 }
 0x4f4   : > { %2520 = vrot.lane.b32.xlu1 %v2467_v10, %s3773_s12 }
 0x4f6   : > { %3726 = vrot.lane.b32.xlu0 %v3705_v39, %s3774_s18 }
 0x4f8   : > { %3741 = vrot.lane.b32.xlu1 %v3740_v7, %s3777_s17 }
 0x4fa   : > { %3731 = vrot.lane.b32.xlu0 %v3705_v39, %s3773_s12 }
 0x4fc   : > { %3746 = vrot.lane.b32.xlu1 %v3740_v7, %s3776_s20 }
 0x4fe   : > { %3736 = vrot.lane.b32.xlu0 %v3700_v52, %s3776_s20 }
 0x502   : > { %2794 = vperm.xlu0 %3569, %v2791_v44  }
 0x50b   : > { %v5583_v55 = vpop.permute.xlu0 %2538  ;;  %v5585_v57 = vpop.permute.xlu1 %2470 }
 0x526   : > { %v5587_v1 = vpop.permute.xlu1 %3596  ;;  %v5589_v16 = vpop.permute.xlu0 %3591 }
 0x527   : > { %v3594_v32 = vunpack.i.h.bf16 %v5589_v16  ;;  %v3593_v14 = vunpack.i.l.bf16 %v5589_v16  ;;  %v3599_v4 = vunpack.i.h.bf16 %v5587_v1  ;;  %v3598_v47 = vunpack.i.l.bf16 %v5587_v1 }
 0x529   : > { %v2727_v40 = vsel %vm2113_vm2, %v3593_v14, %v3594_v32  ;;  %v5640_v8 = vsel %vm2043_vm5, %v3598_v47, %v3599_v4 }
 0x52a   : > { %v3054_v0 = vpack.c.bf16 %v6099_v3, %v2727_v40  ;;  %v5603_v35 = vpop.permute.xlu1 %3601 }
 0x52b   : > { %v3604_v48 = vunpack.i.h.bf16 %v5603_v35  ;;  %v3603_v59 = vunpack.i.l.bf16 %v5603_v35 }
 0x52c   : > { %v5605_v61 = vpop.permute.xlu0 %3636  ;;  %3055 = vmatprep.subr.msk.bf16.mxu0 %vm5598_vm13, %v3054_v0 }
 0x52d   : > { %v3639_v18 = vunpack.i.h.bf16 %v5605_v61  ;;  %v3638_v36 = vunpack.i.l.bf16 %v5605_v61  ;;  %v2693_v20 = vsel %vm2078_vm6, %v3603_v59, %v3604_v48 }
 0x52e   : > { %v5609_v49 = vpop.permute.xlu1 %3606  ;;  %v2775_v44 = vpack.c.bf16 %v2693_v20, %v5640_v8 }
 0x52f   : > { %v3609_v12 = vunpack.i.h.bf16 %v5609_v49  ;;  %v3608_v42 = vunpack.i.l.bf16 %v5609_v49  ;;  %v2661_v7 = vsel %vm2043_vm5, %v3638_v36, %v3639_v18 }
 0x530   : > { %v5611_v11 = vpop.permute.xlu0 %3641 }
 0x531   : > { %v5953_v46 = vunpack.i.h.bf16 %v5611_v11  ;;  %v3643_v60 = vunpack.i.l.bf16 %v5611_v11  ;;  %v2591_v20 = vsel %vm1973_vm7, %v3608_v42, %v3609_v12 }
 0x532   : > { %v5613_v21 = vpop.permute.xlu1 %3611 }
 0x533   : > { %v2695_v13 = vsel %vm2078_vm6, %v3643_v60, %v5953_v46  ;;  %v2694_v39 = vsel %vm2078_vm6, %v3604_v48, %v3643_v60  ;;  %v3614_v40 = vunpack.i.h.bf16 %v5613_v21  ;;  %v3613_v3 = vunpack.i.l.bf16 %v5613_v21 }
 0x534   : > { %v5615_v26 = vpop.permute.xlu0 %3646 }
 0x535   : > { %v5952_v54 = vunpack.i.h.bf16 %v5615_v26  ;;  %v3648_v23 = vunpack.i.l.bf16 %v5615_v26 }
 0x536   : > { %v5617_v34 = vpop.permute.xlu1 %3616 }
 0x538   : > { %v5619_v22 = vpop.permute.xlu0 %3651 }
 0x539   : > { %v5951_v28 = vunpack.i.h.bf16 %v5619_v22  ;;  %v3653_v25 = vunpack.i.l.bf16 %v5619_v22 }
 0x53a   : > { %v5621_v41 = vpop.permute.xlu1 %3621 }
 0x53b   : > { %v2627_v21 = vsel %vm2008_vm4, %v3653_v25, %v5951_v28  ;;  %v2626_v8 = vsel %vm2008_vm4, %v3614_v40, %v3653_v25 }
 0x53c   : > { %v5623_v33 = vpop.permute.xlu0 %3656 }
 0x53e   : > { %v5627_v5 = vpop.permute.xlu1 %3626 }
 0x540   : > { %v5633_v56 = vpop.permute.xlu0 %3661 }
 0x541   : > { %v3664_v48 = vunpack.i.h.bf16 %v5633_v56  ;;  %v3663_v60 = vunpack.i.l.bf16 %v5633_v56 }
 0x542   : > { %v5635_v37 = vpop.permute.xlu1 %3631 }
 0x543   : > { %v3634_v58 = vunpack.i.h.bf16 %v5635_v37  ;;  %v3633_v53 = vunpack.i.l.bf16 %v5635_v37  ;;  %v2559_v16 = vsel %vm1938_vm10, %v3663_v60, %v3664_v48  ;;  %v3759_v37 = vld [vmem:[%s4153_s29 + $0x10] sm:$0xff] }
 0x544   : > { %v5648_v24 = vpop.permute.xlu0 %3666 }
 0x545   : > { %v2728_v31 = vsel %vm2113_vm2, %v3594_v32, %v3633_v53  ;;  %v2729_v43 = vsel %vm2113_vm2, %v3633_v53, %v3634_v58  ;;  %v2660_v32 = vsel %vm2043_vm5, %v3599_v4, %v3638_v36  ;;  %v2777_v53 = vpack.c.bf16 %v2695_v13, %v2661_v7 }
 0x546   : > { %v3065_v38 = vpack.c.bf16 %v6100_v45, %v2729_v43  ;;  %v3068_v10 = vpack.c.bf16 %v3756_v9, %v2728_v31  ;;  %v5666_v52 = vpop.permute.xlu1 %3676  ;;  %v2776_v4 = vpack.c.bf16 %v2694_v39, %v2660_v32  ;;  %v2593_v13 = vsel %vm1973_vm7, %v3648_v23, %v5952_v54 }
 0x547   : > { %v3659_v43 = vunpack.i.h.bf16 %v5623_v33  ;;  %v3658_v45 = vunpack.i.l.bf16 %v5623_v33  ;;  %v2592_v9 = vsel %vm1973_vm7, %v3609_v12, %v3648_v23  ;;  %v2769_v32 = vpack.c.bf16 %v2627_v21, %v2593_v13 }
 0x548   : > { %3066 = vmatprep.subr.msk.bf16.mxu1 %vm5598_vm13, %v3065_v38  ;;  %v5678_v0 = vpop.permute.xlu0 %3671  ;;  %v3678_v38 = vunpack.i.l.bf16 %v5666_v52  ;;  %v3669_v28 = vunpack.i.h.bf16 %v5648_v24  ;;  %v3668_v54 = vunpack.i.l.bf16 %v5648_v24  ;;  %v2768_v12 = vpack.c.bf16 %v2626_v8, %v2592_v9 }
 0x549   : > { %v3673_v31 = vunpack.i.l.bf16 %v5678_v0  ;;  %3069 = vmatpush1.bf16.msk.msra.mxu1 %vm5598_vm13, %v3068_v10  ;;  %v3757_v10 = vld [vmem:[%s4153_s29] sm:$0xff]  ;;  %v3624_v23 = vunpack.i.h.bf16 %v5621_v41  ;;  %v3618_v13 = vunpack.i.l.bf16 %v5617_v34 }
 0x54a   : > { %v5689_v36 = vpop.permute.xlu1 %3686  ;;  %2850 = vmatprep.subr.bf16.mxu1 %v2777_v53  ;;  %v2625_v53 = vsel %vm2008_vm4, %v3613_v3, %v3614_v40  ;;  %v2658_v40 = vsel %vm2043_vm5, %v3678_v38, %v3598_v47 }
 0x54b   : > { %v2726_v25 = vsel %vm2113_vm2, %v3673_v31, %v3593_v14  ;;  %v3619_v14 = vunpack.i.h.bf16 %v5617_v34  ;;  %v3623_v31 = vunpack.i.l.bf16 %v5621_v41  ;;  %v2525_v41 = vsel %vm1903_vm9, %v3658_v45, %v3659_v43 }
 0x54c   : > { %v3057_v39 = vpack.c.bf16 %v3757_v10, %v2726_v25  ;;  %v5705_v7 = vpop.permute.xlu0 %3681  ;;  %v2558_v25 = vsel %vm1938_vm10, %v3624_v23, %v3663_v60  ;;  %v2761_v1 = vpack.c.bf16 %v2559_v16, %v2525_v41  ;;  %v2767_v35 = vpack.c.bf16 %v2625_v53, %v2591_v20 }
 0x54d   : > { %v3683_v46 = vunpack.i.l.bf16 %v5705_v7  ;;  %2851 = vmatpush1.bf16.msra.mxu1 %v2776_v4  ;;  %v3688_v4 = vunpack.i.l.bf16 %v5689_v36  ;;  %v3629_v34 = vunpack.i.h.bf16 %v5627_v5 }
 0x54e   : > { %v5717_v21 = vpop.permute.xlu1 %3696  ;;  %3058 = vmatpush1.bf16.msk.msra.mxu0 %vm5598_vm13, %v3057_v39  ;;  %2852 = vmatprep.subr.bf16.mxu1 %v2769_v32  ;;  %v2557_v39 = vsel %vm1938_vm10, %v3623_v31, %v3624_v23 }
 0x54f   : > { %v2692_v8 = vsel %vm2078_vm6, %v3683_v46, %v3603_v59  ;;  %2809 = vmatprep.subr.bf16.mxu0 %v2775_v44  ;;  %v3698_v47 = vunpack.i.l.bf16 %v5717_v21  ;;  %v2491_v59 = vsel %vm1868_vm8, %v3668_v54, %v3669_v28  ;;  %v2524_v46 = vsel %vm1903_vm9, %v3619_v14, %v3658_v45 }
 0x550   : > { %v2774_v9 = vpack.c.bf16 %v2692_v8, %v2658_v40  ;;  %v5733_v10 = vpop.permute.xlu0 %3691  ;;  %v3628_v44 = vunpack.i.l.bf16 %v5627_v5  ;;  %v2760_v32 = vpack.c.bf16 %v2558_v25, %v2524_v46  ;;  %v2590_v20 = vsel %vm1973_vm7, %v3688_v4, %v3608_v42 }
 0x551   : > { %v3693_v38 = vunpack.i.l.bf16 %v5733_v10  ;;  %2853 = vmatpush1.bf16.msra.mxu1 %v2768_v12  ;;  %v2490_v16 = vsel %vm1868_vm8, %v3629_v34, %v3668_v54  ;;  %v2753_v5 = vpack.c.bf16 %v2491_v59, %v5521_v17  ;;  %v2523_v40 = vsel %vm1903_vm9, %v3618_v13, %v3619_v14 }
 0x552   : > { %v2725_v60 = vpop.permute.xlu1 %2724  ;;  %2810 = vmatpush1.bf16.msra.mxu0 %v2774_v9  ;;  %2854 = vmatprep.subr.bf16.mxu1 %v2761_v1  ;;  %v2522_v8 = vsel %vm1903_vm9, %v3698_v47, %v3618_v13  ;;  %v2759_v23 = vpack.c.bf16 %v2557_v39, %v2523_v40  ;;  %v2489_v49 = vsel %vm1868_vm8, %v3628_v44, %v3629_v34  ;;  %v3674_v4 = vunpack.i.h.bf16 %v5678_v0 }
 0x553   : > { %v2624_v53 = vsel %vm2008_vm4, %v3693_v38, %v3613_v3  ;;  %2811 = vmatprep.subr.bf16.mxu0 %v2767_v35  ;;  %v2556_v42 = vsel %vm1938_vm10, %v5583_v55, %v3623_v31  ;;  %v2752_v54 = vpack.c.bf16 %v2490_v16, %v5514_v63  ;;  %v2488_v17 = vsel %vm1868_vm8, %v5585_v57, %v3628_v44  ;;  %v5766_v63 = vld [vmem:[%s5876_s8] sm:$0xf]  ;;  %v3758_v38 = vld [vmem:[%s4153_s29 + $0x18] sm:$0xff]  ;;  %s3088_s29 = sshll.u32 %s6105_s14, 6 }
 0x554   : > { %v2766_v45 = vpack.c.bf16 %v2624_v53, %v2590_v20  ;;  %v5749_v12 = vpop.permute.xlu0 %3701  ;;  %v2758_v3 = vpack.c.bf16 %v2556_v42, %v2522_v8  ;;  %v2751_v9 = vpack.c.bf16 %v2489_v49, %v5511_v62  ;;  %v3061_v0 = vpack.c.bf16 %v2488_v17, %v5503_v27  ;;  %s5855_s15 = scalar_lea.vmem %s5878_s10, %s3088_s29 }
 0x555   : > { %2855 = vmatpush1.bf16.msra.mxu1 %v2760_v32  ;;  %v3679_v46 = vunpack.i.h.bf16 %v5666_v52  ;;  %v2730_v34 = vsel %vm2113_vm2, %v3634_v58, %v3674_v4  ;;  %v3684_v27 = vunpack.i.h.bf16 %v5705_v7  ;;  %v6101_v32 = vunpack.i.h.bf16 %v5611_v11 }
 0x556   : > { %v2657_v41 = vpop.permute.xlu1 %2656  ;;  %2812 = vmatpush1.bf16.msra.mxu0 %v2766_v45  ;;  %2856 = vmatprep.subr.bf16.mxu1 %v2753_v5  ;;  %v3075_v52 = vpack.c.bf16 %v3759_v37, %v2730_v34  ;;  %v3689_v40 = vunpack.i.h.bf16 %v5689_v36  ;;  %v3694_v17 = vunpack.i.h.bf16 %v5733_v10  ;;  %v6102_v36 = vunpack.i.h.bf16 %v5615_v26 }
 0x557   : > { %2813 = vmatprep.subr.bf16.mxu0 %v2759_v23  ;;  %v2662_v7 = vsel %vm2043_vm5, %v3639_v18, %v3679_v46  ;;  %v2696_v20 = vsel %vm2078_vm6, %v6101_v32, %v3684_v27  ;;  %v6103_v10 = vunpack.i.h.bf16 %v5619_v22 }
 0x558   : > { %v3707_v14 = vpop.permute.xlu0 %3706  ;;  %v2778_v2 = vpack.c.bf16 %v2696_v20, %v2662_v7 }
 0x559   : > { %v3709_v13 = vunpack.i.h.bf16 %v3707_v14  ;;  %v3708_v25 = vunpack.i.l.bf16 %v3707_v14  ;;  %2857 = vmatpush1.bf16.msra.mxu1 %v2752_v54  ;;  %v3699_v54 = vunpack.i.h.bf16 %v5717_v21 }
 0x55a   : > { %v2691_v55 = vpop.permute.xlu1 %2690  ;;  %2814 = vmatpush1.bf16.msra.mxu0 %v2758_v3 }
 0x55b   : > { %v2733_v57 = vsel %vm2113_vm2, %v3709_v13, %v2725_v60  ;;  %v2731_v31 = vsel %vm2113_vm2, %v3674_v4, %v3708_v25  ;;  %v2732_v1 = vsel %vm2113_vm2, %v3708_v25, %v3709_v13  ;;  %2815 = vmatprep.subr.bf16.mxu0 %v2751_v9  ;;  %v2526_v21 = vsel %vm1903_vm9, %v3659_v43, %v3699_v54 }
 0x55c   : > { %v3079_v62 = vpack.c.bf16 %v4655_v50, %v2733_v57  ;;  %v3072_v47 = vpack.c.bf16 %v4637_v51, %v2731_v31  ;;  %v3082_v35 = vpack.c.bf16 %v3758_v38, %v2732_v1  ;;  %v3712_v59 = vpop.permute.xlu0 %3711  ;;  %3070 = vmatmul.mubr.msk.bf16.vlgmr.msra.gmra.mxu1 %vm2797_vm14, %v5766_v63  ;;  %v2628_v25 = vsel %vm2008_vm4, %v6103_v10, %v3694_v17 }
 0x55d   : > { %2956 = vmatprep.mubr.bf16.mxu1 %v3778_v29  ;;  %v3714_v50 = vunpack.i.h.bf16 %v3712_v59  ;;  %v3713_v44 = vunpack.i.l.bf16 %v3712_v59  ;;  %v3704_v57 = vunpack.i.h.bf16 %v5749_v12 }
 0x55e   : > { %v2589_v51 = vpop.permute.xlu1 %2588  ;;  %3062 = vmatpush1.bf16.msk.msra.mxu0 %vm3060_vm0, %v3061_v0  ;;  %3080 = vmatprep.subr.msk.bf16.mxu1 %vm5598_vm13, %v3079_v62 }
 0x55f   : > { %3073 = vmatprep.subr.msk.bf16.mxu0 %vm5598_vm13, %v3072_v47  ;;  %3083 = vmatpush1.bf16.msk.msra.mxu1 %vm5598_vm13, %v3082_v35  ;;  %v2664_v53 = vsel %vm2043_vm5, %v3713_v44, %v3714_v50  ;;  %v2663_v45 = vsel %vm2043_vm5, %v3679_v46, %v3713_v44  ;;  %v2665_v5 = vsel %vm2043_vm5, %v3714_v50, %v2657_v41 }
 0x560   : > { %v3717_v58 = vpop.permute.xlu0 %3716  ;;  %v2594_v41 = vsel %vm1973_vm7, %v6102_v36, %v3689_v40 }
 0x561   : > { %v3719_v60 = vunpack.i.h.bf16 %v3717_v58  ;;  %v3718_v39 = vunpack.i.l.bf16 %v3717_v58  ;;  %3063 = vmatmul.mubr.msk.bf16.vlgmr.msra.gmra.mxu0 %vm2797_vm14, %v5766_v63  ;;  %v2770_v59 = vpack.c.bf16 %v2628_v25, %v2594_v41 }
 0x562   : > { %v2623_v16 = vpop.permute.xlu1 %2622  ;;  %3076 = vmatpush1.bf16.msk.msra.mxu0 %vm5598_vm13, %v3075_v52  ;;  %2915 = vmatprep.mubr.bf16.mxu0 %v3778_v29  ;;  %v3703_v29 = vunpack.i.l.bf16 %v5749_v12 }
 0x563   : > { %v2698_v61 = vsel %vm2078_vm6, %v3718_v39, %v3719_v60  ;;  %v2697_v18 = vsel %vm2078_vm6, %v3684_v27, %v3718_v39  ;;  %v2699_v11 = vsel %vm2078_vm6, %v3719_v60, %v2691_v55 }
 0x564   : > { %v2780_v8 = vpack.c.bf16 %v2698_v61, %v2664_v53  ;;  %v3722_v23 = vpop.permute.xlu0 %3721  ;;  %v2779_v49 = vpack.c.bf16 %v2697_v18, %v2663_v45  ;;  %v2781_v42 = vpack.c.bf16 %v2699_v11, %v2665_v5  ;;  %v2560_v31 = vsel %vm1938_vm10, %v3664_v48, %v3703_v29 }
 0x565   : > { %v3724_v3 = vunpack.i.h.bf16 %v3722_v23  ;;  %v3723_v14 = vunpack.i.l.bf16 %v3722_v23  ;;  %v2762_v27 = vpack.c.bf16 %v2560_v31, %v2526_v21  ;;  %v2561_v37 = vsel %vm1938_vm10, %v3703_v29, %v3704_v57 }
 0x566   : > { %v2521_v4 = vpop.permute.xlu1 %2520  ;;  %2891 = vmatprep.subr.bf16.mxu0 %v2779_v49  ;;  %2932 = vmatprep.subr.bf16.mxu1 %v2781_v42 }
 0x567   : > { %2892 = vmatpush1.bf16.msra.mxu0 %v2778_v2  ;;  %2933 = vmatpush1.bf16.msra.mxu1 %v2780_v8  ;;  %v2596_v26 = vsel %vm1973_vm7, %v3723_v14, %v3724_v3  ;;  %v2595_v0 = vsel %vm1973_vm7, %v3689_v40, %v3723_v14  ;;  %v2597_v62 = vsel %vm1973_vm7, %v3724_v3, %v2589_v51 }
 0x568   : > { %v3727_v13 = vpop.permute.xlu0 %3726 }
 0x569   : > { %v3729_v9 = vunpack.i.h.bf16 %v3727_v13  ;;  %v3728_v55 = vunpack.i.l.bf16 %v3727_v13 }
 0x56a   : > { %v3742_v1 = vpop.permute.xlu1 %3741 }
 0x56b   : > { %v2630_v33 = vsel %vm2008_vm4, %v3728_v55, %v3729_v9  ;;  %v3743_v43 = vunpack.i.l.bf16 %v3742_v1  ;;  %v2629_v22 = vsel %vm2008_vm4, %v3694_v17, %v3728_v55  ;;  %v3744_v38 = vunpack.i.h.bf16 %v3742_v1 }
 0x56c   : > { %v2772_v47 = vpack.c.bf16 %v2630_v33, %v2596_v26  ;;  %v3732_v35 = vpop.permute.xlu0 %3731  ;;  %v2771_v12 = vpack.c.bf16 %v2629_v22, %v2595_v0  ;;  %v2631_v56 = vsel %vm2008_vm4, %v3729_v9, %v2623_v16 }
 0x56d   : > { %v3734_v48 = vunpack.i.h.bf16 %v3732_v35  ;;  %v3733_v46 = vunpack.i.l.bf16 %v3732_v35  ;;  %v2773_v34 = vpack.c.bf16 %v2631_v56, %v2597_v62  ;;  %v2562_v50 = vsel %vm1938_vm10, %v3704_v57, %v3743_v43 }
 0x56e   : > { %v3747_v44 = vpop.permute.xlu1 %3746  ;;  %2893 = vmatprep.subr.bf16.mxu0 %v2771_v12  ;;  %v2563_v53 = vsel %vm1938_vm10, %v3743_v43, %v3744_v38 }
 0x56f   : > { %v2528_v52 = vsel %vm1903_vm9, %v3733_v46, %v3734_v48  ;;  %v3749_v51 = vunpack.i.h.bf16 %v3747_v44  ;;  %v3748_v58 = vunpack.i.l.bf16 %v3747_v44  ;;  %2934 = vmatprep.subr.bf16.mxu1 %v2773_v34  ;;  %2894 = vmatpush1.bf16.msra.mxu0 %v2770_v59  ;;  %v2527_v7 = vsel %vm1903_vm9, %v3699_v54, %v3733_v46 }
 0x570   : > { %v2764_v60 = vpack.c.bf16 %v2562_v50, %v2528_v52  ;;  %2935 = vmatpush1.bf16.msra.mxu1 %v2772_v47  ;;  %v3737_v39 = vpop.permute.xlu0 %3736  ;;  %v2763_v32 = vpack.c.bf16 %v2561_v37, %v2527_v7  ;;  %v2529_v20 = vsel %vm1903_vm9, %v3734_v48, %v2521_v4 }
 0x571   : > { %v3739_v16 = vunpack.i.h.bf16 %v3737_v39  ;;  %v3738_v45 = vunpack.i.l.bf16 %v3737_v39  ;;  %v2765_v61 = vpack.c.bf16 %v2563_v53, %v2529_v20  ;;  %v2495_v18 = vsel %vm1868_vm8, %v3748_v58, %v3749_v51 }
 0x572   : > { %2895 = vmatprep.subr.bf16.mxu0 %v2763_v32  ;;  %v2757_v5 = vpack.c.bf16 %v2495_v18, %v5560_v6 }
 0x573   : > { %v2494_v11 = vsel %vm1868_vm8, %v3739_v16, %v3748_v58  ;;  %v2492_v40 = vsel %vm1868_vm8, %v3669_v28, %v3738_v45  ;;  %2936 = vmatprep.subr.bf16.mxu1 %v2765_v61  ;;  %2896 = vmatpush1.bf16.msra.mxu0 %v2762_v27  ;;  %v2493_v8 = vsel %vm1868_vm8, %v3738_v45, %v3739_v16 }
 0x574   : > { %v2756_v23 = vpack.c.bf16 %v2494_v11, %v5552_v19  ;;  %v2754_v49 = vpack.c.bf16 %v2492_v40, %v5524_v15  ;;  %2937 = vmatpush1.bf16.msra.mxu1 %v2764_v60  ;;  %v2755_v42 = vpack.c.bf16 %v2493_v8, %v5541_v30 }
 0x575   : > { %2938 = vmatprep.subr.bf16.mxu1 %v2757_v5 }
 0x576   : > { %2897 = vmatprep.subr.bf16.mxu0 %v2755_v42 }
 0x577   : > { %2898 = vmatpush1.bf16.msra.mxu0 %v2754_v49 }
 0x578   : > { %2939 = vmatpush1.bf16.msra.mxu1 %v2756_v23 }
 0x57a   : > { %3077 = vmatmul.mubr.msk.bf16.vlgmr.msra.gmra.mxu0 %vm2797_vm14, %v5766_v63 }
 0x57b   : > { %3084 = vmatmul.mubr.msk.bf16.vlgmr.msra.gmra.mxu1 %vm2797_vm14, %v5766_v63 }
 0x57d   : > { %v2795_v15 = vpop.permute.xlu0 %2794 }
 0x61c   : > { %v2876_v30 = vpop.f32.mrf.mxu1 }
 0x61d   : > { %v2877_v19 = vadd.f32 %v2876_v30, %v2795_v15 }
 0x61e   : > { %v2878_v6 = vpop.f32.mrf.mxu1 }
 0x61f   : > { %2967 = vst [vmem:[%s5855_s15 + $0x10] sm:$0xff] %v2877_v19  ;;  %v2879_v24 = vadd.f32 %v2878_v6, %v2795_v15 }
 0x620   : > { %v2880_v28 = vpop.f32.mrf.mxu1 }
 0x621   : > { %2968 = vst [vmem:[%s5855_s15 + $0x18] sm:$0xff] %v2879_v24  ;;  %v2835_v63 = vpop.f32.mrf.mxu0 }
 0x622   : > { %v2836_v2 = vadd.f32 %v2835_v63, %v2795_v15  ;;  %v2881_v54 = vpop.f32.mrf.mxu1 }
 0x623   : > { %v2837_v17 = vpop.f32.mrf.mxu0 }
 0x624   : > { %2965 = vst [vmem:[%s5855_s15] sm:$0xff] %v2836_v2  ;;  %v2838_v29 = vadd.f32 %v2837_v17, %v2795_v15 }
 0x625   : > { %v2839_v3 = vpop.f32.mrf.mxu0 }
 0x626   : > { %2966 = vst [vmem:[%s5855_s15 + $0x8] sm:$0xff] %v2838_v29 }
 0x627   : > { %v2840_v14 = vpop.f32.mrf.mxu0 }
 0x63a   : > { %v2917_v4 = vpop.f32.mrf.mxu0 }
 0x63b   : > { %v2918_v36 = vadd.f32 %v2917_v4, %v2795_v15  ;;  %v2958_v41 = vpop.f32.mrf.mxu1 }
 0x63c   : > { %v2959_v13 = vadd.f32 %v2958_v41, %v2795_v15  ;;  %v2919_v21 = vpop.f32.mrf.mxu0 }
 0x63d   : > { %2969 = vst [vmem:[%s5855_s15 + $0x20] sm:$0xff] %v2918_v36  ;;  %v2920_v10 = vadd.f32 %v2919_v21, %v2795_v15  ;;  %v2960_v25 = vpop.f32.mrf.mxu1 }
 0x63e   : > { %2971 = vst [vmem:[%s5855_s15 + $0x30] sm:$0xff] %v2959_v13  ;;  %v2961_v9 = vadd.f32 %v2960_v25, %v2795_v15  ;;  %v2921_v55 = vpop.f32.mrf.mxu0 }
 0x63f   : > { %2970 = vst [vmem:[%s5855_s15 + $0x28] sm:$0xff] %v2920_v10  ;;  %v2962_v57 = vpop.f32.mrf.mxu1 }
 0x640   : > { %2972 = vst [vmem:[%s5855_s15 + $0x38] sm:$0xff] %v2961_v9  ;;  %v2922_v31 = vpop.f32.mrf.mxu0 }
 0x641   : > { %v2963_v26 = vpop.f32.mrf.mxu1 }
 0x642 PF: > { %s20_s13 = sadd.s32 1, %s3766_s13  }
 0x643   : > { %p17_p4 = scmp.ge.s32.totalorder %s20_s13, 4  }
 0x645   :  { %19 = sbr.rel (!%p17_p4) target bundleno = 1 (0x1), region = 90 }

</bundles_post_ra>
